<compile_context>
chip_gen: v6e
topology: v6e:2x2x1
jax: 0.10.0
libtpu: 0.0.40
codegen_flags: <defaults>
</compile_context>

<pallas_src>
import functools

import jax
import jax.numpy as jnp
import numpy as np
from jax.experimental import pallas as pl
from jax.experimental.pallas import tpu as pltpu

OUT_W = 128          # lane-dense output width (>= n_actions)
GATE_W = 3 * 128     # padded gate width: r/z/n at lane offsets 0/128/256


def _round_up(x, m):
    return (x + m - 1) // m * m


# ----------------------------------------------------------------------------
# Pallas kernel: one invocation processes the whole sequence.
#   x_ref : (L*BAp, Vp)    time-major inputs (zero padded)
#   w_ref : (R, 384)       packed weight/bias slab
#   q_ref : (L*BAp, 128)   lane-dense output (cols >= nA are zero)
# ----------------------------------------------------------------------------
def fop_kernel(x_ref, w_ref, q_ref, *, L, BAp, Vp, H):
    f32 = jnp.float32
    o_wih = Vp
    o_whh = Vp + H
    o_w2 = Vp + 2 * H
    o_b = Vp + 3 * H

    # ---- Phase 1: batched fc1 + input->hidden gate projection (all t) ------
    x = x_ref[...]                                         # (L*BAp, Vp)
    w1 = w_ref[0:Vp, 0:H]                                  # (Vp, H)
    b1 = w_ref[o_b + 0:o_b + 1, 0:H]                       # (1, H)
    x1 = jnp.maximum(jnp.dot(x, w1, preferred_element_type=f32) + b1, 0.0)

    wih = w_ref[o_wih:o_wih + H, :]                        # (H, 384)
    bic = w_ref[o_b + 1:o_b + 2, :]                        # (1, 384): bih (+bhr,bhz)
    # gx for every timestep, kept in vregs (~24 vregs at L*BAp=64).
    gx_all = jnp.dot(x1, wih, preferred_element_type=f32) + bic   # (L*BAp, 384)

    # ---- Phase 2: GRU recurrence (only h @ Whh stays sequential) -----------
    whh = w_ref[o_whh:o_whh + H, :]                        # (H, 384)
    bhn = w_ref[o_b + 2:o_b + 3, 0:H]                      # (1, H)
    h = jnp.zeros((BAp, H), f32)                           # h0 = 0 (as in PyTorch)
    hs = []
    for t in range(L):                                     # static, fully unrolled
        gx = gx_all[t * BAp:(t + 1) * BAp, :]              # sublane-aligned slice
        gh = jnp.dot(h, whh, preferred_element_type=f32)   # (BAp, 384) fused gates
        # All gate slices start on 128-lane (vreg) boundaries -> no relayouts.
        r = jax.nn.sigmoid(gx[:, 0:H] + gh[:, 0:H])
        z = jax.nn.sigmoid(gx[:, 128:128 + H] + gh[:, 128:128 + H])
        n = jnp.tanh(gx[:, 256:256 + H] + r * (gh[:, 256:256 + H] + bhn))
        h = (1.0 - z) * n + z * h
        hs.append(h)
    hall = jnp.concatenate(hs, axis=0)                     # (L*BAp, H), vregs

    # ---- Phase 3: batched fc2 into a lane-dense 128-wide block -------------
    w2 = w_ref[o_w2:o_w2 + H, 0:OUT_W]                     # (H, 128), zero-padded
    b2 = w_ref[o_b + 3:o_b + 4, 0:OUT_W]                   # (1, 128)
    q_ref[...] = jnp.dot(hall, w2, preferred_element_type=f32) + b2


# ----------------------------------------------------------------------------
# One-time parameter packing (hoisted out of the per-call path).
# Builds a single lane-aligned f32 slab of shape (R, 384):
#   rows [0, Vp)            : w1^T              cols [0, H)
#   rows [Vp, Vp+H)         : W_ih^T  (r/z/n)   cols [0,H) / [128,128+H) / [256,256+H)
#   rows [Vp+H, Vp+2H)      : W_hh^T  (r/z/n)   same column layout
#   rows [Vp+2H, Vp+3H)     : w2^T              cols [0, nA)
#   row  o_b+0 : b1 ; o_b+1 : b_ih (+ b_hr,b_hz folded) ; o_b+2 : b_hn ; o_b+3 : b2
# ----------------------------------------------------------------------------
def pack_fop_params(params, *, input_dim, hidden_dim, n_actions):
    H, nA, v = hidden_dim, n_actions, input_dim
    Vp = _round_up(v, 8)
    o_wih, o_whh, o_w2, o_b = Vp, Vp + H, Vp + 2 * H, Vp + 3 * H
    R = _round_up(o_b + 4, 8)

    f32 = jnp.float32
    wih = params["wih"].astype(f32)                        # (3H, H) rows: [r; z; n]
    whh = params["whh"].astype(f32)
    bih = params["bih"].astype(f32)
    bhh = params["bhh"].astype(f32)

    slab = jnp.zeros((R, GATE_W), f32)
    slab = slab.at[0:v, 0:H].set(params["w1"].T.astype(f32))
    for k in range(3):                                     # gate k -> lanes [k*128, k*128+H)
        slab = slab.at[o_wih:o_wih + H, k * 128:k * 128 + H].set(
            wih[k * H:(k + 1) * H, :].T)
        slab = slab.at[o_whh:o_whh + H, k * 128:k * 128 + H].set(
            whh[k * H:(k + 1) * H, :].T)
    slab = slab.at[o_w2:o_w2 + H, 0:nA].set(params["w2"].T.astype(f32))
    slab = slab.at[o_b + 0, 0:H].set(params["b1"].astype(f32))
    # fold b_hr / b_hz into the input-gate bias; b_hn stays inside r*(...).
    slab = slab.at[o_b + 1, 0:H].set(bih[0:H] + bhh[0:H])
    slab = slab.at[o_b + 1, 128:128 + H].set(bih[H:2 * H] + bhh[H:2 * H])
    slab = slab.at[o_b + 1, 256:256 + H].set(bih[2 * H:3 * H])
    slab = slab.at[o_b + 2, 0:H].set(bhh[2 * H:3 * H])
    slab = slab.at[o_b + 3, 0:nA].set(params["b2"].astype(f32))
    return slab


# ----------------------------------------------------------------------------
# Jitted forward: only activation layout + the kernel call.
# ----------------------------------------------------------------------------
@functools.partial(jax.jit, static_argnames=("hidden_dim", "n_actions"))
def fop_critic_forward(inputs, slab, *, hidden_dim, n_actions):
    b, l, a, v = inputs.shape
    ba = b * a
    H, nA = hidden_dim, n_actions
    BAp = _round_up(ba, 8)            # pad (batch*agent) rows to sublane multiple
    Vp = _round_up(v, 8)
    R, GW = slab.shape

    # (b, l, a, v) -> (l*BAp, Vp): time-major, batch-major-then-agent rows
    # (matches permute(0,2,1,3).reshape(b*a, l, -1) in PyTorch), zero padded.
    x = jnp.transpose(inputs, (1, 0, 2, 3)).reshape(l, ba, v).astype(jnp.float32)
    x = jnp.pad(x, ((0, 0), (0, BAp - ba), (0, Vp - v))).reshape(l * BAp, Vp)

    kernel = functools.partial(fop_kernel, L=l, BAp=BAp, Vp=Vp, H=H)

    q_flat = pl.pallas_call(
        kernel,
        out_shape=jax.ShapeDtypeStruct((l * BAp, OUT_W), jnp.float32),
        grid_spec=pltpu.PrefetchScalarGridSpec(
            num_scalar_prefetch=0,
            grid=(1,),                                      # whole sequence in one step
            in_specs=[
                pl.BlockSpec((l * BAp, Vp), lambda i: (0, 0)),   # x
                pl.BlockSpec((R, GW), lambda i: (0, 0)),         # weight slab
            ],
            out_specs=pl.BlockSpec((l * BAp, OUT_W), lambda i: (0, 0)),
        ),
        compiler_params=pltpu.CompilerParams(
            dimension_semantics=("arbitrary",)),
    )(x, slab)

    # (l*BAp, 128) -> drop padded rows / columns -> (b, l, a, nA)
    q = q_flat.reshape(l, BAp, OUT_W)[:, :ba, :nA].reshape(l, b, a, nA)
    return jnp.transpose(q, (1, 0, 2, 3))


# ----------------------------------------------------------------------------
# Pure-JAX reference (mirrors the PyTorch forward exactly)
# ----------------------------------------------------------------------------
def fop_critic_reference(inputs, params, *, hidden_dim, n_actions):
    b, l, a, v = inputs.shape
    H = hidden_dim
    x = jax.nn.relu(inputs @ params["w1"].T + params["b1"])        # (b,l,a,H)
    x = jnp.transpose(x, (0, 2, 1, 3)).reshape(b * a, l, H)

    wih, bih = params["wih"], params["bih"]
    whh, bhh = params["whh"], params["bhh"]

    def step(h, xt):
        gx = xt @ wih.T + bih
        gh = h @ whh.T + bhh
        r = jax.nn.sigmoid(gx[:, :H] + gh[:, :H])
        z = jax.nn.sigmoid(gx[:, H:2 * H] + gh[:, H:2 * H])
        n = jnp.tanh(gx[:, 2 * H:] + r * gh[:, 2 * H:])
        h2 = (1.0 - z) * n + z * h
        return h2, h2

    h0 = jnp.zeros((b * a, H), jnp.float32)
    _, hs = jax.lax.scan(step, h0, jnp.transpose(x, (1, 0, 2)))    # (l, b*a, H)
    h = jnp.transpose(hs, (1, 0, 2)).reshape(b, a, l, H)
    h = jnp.transpose(h, (0, 2, 1, 3))                             # (b, l, a, H)
    return h @ params["w2"].T + params["b2"]


# ----------------------------------------------------------------------------
# Main
# ----------------------------------------------------------------------------
if __name__ == "__main__":
    # Synthetic "scheme"/args: obs=10, n_actions=5, n_agents=3
    OBS, N_ACTIONS, N_AGENTS = 10, 5, 3
    INPUT_SHAPE = OBS + N_ACTIONS + N_AGENTS        # 18, as in _get_input_shape
    HIDDEN = 64                                     # fc1 out / rnn_hidden_dim
    B, L = 2, 8                                     # batch, seq len

    key = jax.random.PRNGKey(0)
    ks = jax.random.split(key, 9)
    scale = 0.1
    params = {
        "w1":  scale * jax.random.normal(ks[0], (HIDDEN, INPUT_SHAPE), jnp.float32),
        "b1":  scale * jax.random.normal(ks[1], (HIDDEN,), jnp.float32),
        "wih": scale * jax.random.normal(ks[2], (3 * HIDDEN, HIDDEN), jnp.float32),
        "bih": scale * jax.random.normal(ks[3], (3 * HIDDEN,), jnp.float32),
        "whh": scale * jax.random.normal(ks[4], (3 * HIDDEN, HIDDEN), jnp.float32),
        "bhh": scale * jax.random.normal(ks[5], (3 * HIDDEN,), jnp.float32),
        "w2":  scale * jax.random.normal(ks[6], (N_ACTIONS, HIDDEN), jnp.float32),
        "b2":  scale * jax.random.normal(ks[7], (N_ACTIONS,), jnp.float32),
    }

    inputs = jax.random.normal(ks[8], (B, L, N_AGENTS, INPUT_SHAPE), jnp.float32)

    # Pack parameters once (outside the per-call path); reuse across calls.
    slab = jax.block_until_ready(
        pack_fop_params(params, input_dim=INPUT_SHAPE,
                        hidden_dim=HIDDEN, n_actions=N_ACTIONS))

    q = fop_critic_forward(inputs, slab, hidden_dim=HIDDEN, n_actions=N_ACTIONS)
    q = jax.block_until_ready(q)

    q_ref = fop_critic_reference(inputs, params, hidden_dim=HIDDEN,
                                 n_actions=N_ACTIONS)
    q_ref = jax.block_until_ready(q_ref)

    assert q.shape == (B, L, N_AGENTS, N_ACTIONS), q.shape
    np.testing.assert_allclose(np.asarray(q), np.asarray(q_ref),
                               rtol=1e-3, atol=1e-3)
    print("KERNEL_OK")
</pallas_src>

<mosaic_0001>
module attributes {stable_mosaic.version = 11 : i64} {
  func.func @fop_kernel(%arg0: i32, %arg1: memref<64x24xf32, #tpu.memory_space<vmem>>, %arg2: memref<224x384xf32, #tpu.memory_space<vmem>>, %arg3: memref<64x128xf32, #tpu.memory_space<vmem>>) attributes {dimension_semantics = [#tpu.dimension_semantics<arbitrary>], iteration_bounds = array<i64: 1>, scalar_prefetch = 0 : i64, scratch_operands = 0 : i64, tpu.core_type = #tpu.core_type<tc>, window_params = [{pipeline_mode = #tpu.pipeline_mode<synchronous>, transform_indices = @transform_0, window_bounds = array<i64: 64, 24>}, {pipeline_mode = #tpu.pipeline_mode<synchronous>, transform_indices = @transform_1, window_bounds = array<i64: 224, 384>}, {pipeline_mode = #tpu.pipeline_mode<synchronous>, transform_indices = @transform_2, window_bounds = array<i64: 64, 128>}]} {
    %c0 = arith.constant 0 : index
    %c0_0 = arith.constant 0 : index
    %0 = vector.load %arg1[%c0, %c0_0] : memref<64x24xf32, #tpu.memory_space<vmem>>, vector<64x24xf32>
    %c0_1 = arith.constant 0 : index
    %c0_2 = arith.constant 0 : index
    %1 = vector.load %arg2[%c0_1, %c0_2] : memref<224x384xf32, #tpu.memory_space<vmem>>, vector<24x64xf32>
    %c216 = arith.constant 216 : index
    %c0_3 = arith.constant 0 : index
    %2 = vector.load %arg2[%c216, %c0_3] : memref<224x384xf32, #tpu.memory_space<vmem>>, vector<1x64xf32>
    %cst = arith.constant dense<0.000000e+00> : vector<64x64xf32>
    %3 = tpu.matmul %0, %1, %cst {dimension_numbers = #tpu.dot_dimension_numbers<[1], [0], [0], [1], [0, 0, 1, 1], [], []>} : vector<64x24xf32>, vector<24x64xf32>, vector<64x64xf32> -> vector<64x64xf32>
    %4 = vector.broadcast %2 : vector<1x64xf32> to vector<64x64xf32>
    %5 = arith.addf %3, %4 : vector<64x64xf32>
    %cst_4 = arith.constant 0.000000e+00 : f32
    %6 = vector.broadcast %cst_4 : f32 to vector<64x64xf32>
    %7 = arith.maximumf %5, %6 : vector<64x64xf32>
    %c24 = arith.constant 24 : index
    %c0_5 = arith.constant 0 : index
    %8 = vector.load %arg2[%c24, %c0_5] : memref<224x384xf32, #tpu.memory_space<vmem>>, vector<64x384xf32>
    %c217 = arith.constant 217 : index
    %c0_6 = arith.constant 0 : index
    %9 = vector.load %arg2[%c217, %c0_6] : memref<224x384xf32, #tpu.memory_space<vmem>>, vector<1x384xf32>
    %cst_7 = arith.constant dense<0.000000e+00> : vector<64x384xf32>
    %10 = tpu.matmul %7, %8, %cst_7 {dimension_numbers = #tpu.dot_dimension_numbers<[1], [0], [0], [1], [0, 0, 1, 1], [], []>} : vector<64x64xf32>, vector<64x384xf32>, vector<64x384xf32> -> vector<64x384xf32>
    %11 = vector.broadcast %9 : vector<1x384xf32> to vector<64x384xf32>
    %12 = arith.addf %10, %11 : vector<64x384xf32>
    %c88 = arith.constant 88 : index
    %c0_8 = arith.constant 0 : index
    %13 = vector.load %arg2[%c88, %c0_8] : memref<224x384xf32, #tpu.memory_space<vmem>>, vector<64x384xf32>
    %c218 = arith.constant 218 : index
    %c0_9 = arith.constant 0 : index
    %14 = vector.load %arg2[%c218, %c0_9] : memref<224x384xf32, #tpu.memory_space<vmem>>, vector<1x64xf32>
    %cst_10 = arith.constant 0.000000e+00 : f32
    %15 = vector.broadcast %cst_10 : f32 to vector<8x64xf32>
    %16 = vector.extract_strided_slice %12 {offsets = [0, 0], sizes = [8, 384], strides = [1, 1]} : vector<64x384xf32> to vector<8x384xf32>
    %cst_11 = arith.constant dense<0.000000e+00> : vector<8x384xf32>
    %17 = tpu.matmul %15, %13, %cst_11 {dimension_numbers = #tpu.dot_dimension_numbers<[1], [0], [0], [1], [0, 0, 1, 1], [], []>} : vector<8x64xf32>, vector<64x384xf32>, vector<8x384xf32> -> vector<8x384xf32>
    %18 = vector.extract_strided_slice %16 {offsets = [0, 0], sizes = [8, 64], strides = [1, 1]} : vector<8x384xf32> to vector<8x64xf32>
    %19 = vector.extract_strided_slice %17 {offsets = [0, 0], sizes = [8, 64], strides = [1, 1]} : vector<8x384xf32> to vector<8x64xf32>
    %20 = arith.addf %18, %19 : vector<8x64xf32>
    %21 = arith.negf %20 : vector<8x64xf32>
    %22 = math.exp %21 : vector<8x64xf32>
    %cst_12 = arith.constant 1.000000e+00 : f32
    %23 = vector.broadcast %cst_12 : f32 to vector<8x64xf32>
    %24 = arith.addf %23, %22 : vector<8x64xf32>
    %25 = arith.divf %23, %24 : vector<8x64xf32>
    %26 = vector.extract_strided_slice %16 {offsets = [0, 128], sizes = [8, 64], strides = [1, 1]} : vector<8x384xf32> to vector<8x64xf32>
    %27 = vector.extract_strided_slice %17 {offsets = [0, 128], sizes = [8, 64], strides = [1, 1]} : vector<8x384xf32> to vector<8x64xf32>
    %28 = arith.addf %26, %27 : vector<8x64xf32>
    %29 = arith.negf %28 : vector<8x64xf32>
    %30 = math.exp %29 : vector<8x64xf32>
    %cst_13 = arith.constant 1.000000e+00 : f32
    %31 = vector.broadcast %cst_13 : f32 to vector<8x64xf32>
    %32 = arith.addf %31, %30 : vector<8x64xf32>
    %33 = arith.divf %31, %32 : vector<8x64xf32>
    %34 = vector.extract_strided_slice %16 {offsets = [0, 256], sizes = [8, 64], strides = [1, 1]} : vector<8x384xf32> to vector<8x64xf32>
    %35 = vector.extract_strided_slice %17 {offsets = [0, 256], sizes = [8, 64], strides = [1, 1]} : vector<8x384xf32> to vector<8x64xf32>
    %36 = vector.broadcast %14 : vector<1x64xf32> to vector<8x64xf32>
    %37 = arith.addf %35, %36 : vector<8x64xf32>
    %38 = arith.mulf %25, %37 : vector<8x64xf32>
    %39 = arith.addf %34, %38 : vector<8x64xf32>
    %40 = math.tanh %39 : vector<8x64xf32>
    %cst_14 = arith.constant 1.000000e+00 : f32
    %41 = vector.broadcast %cst_14 : f32 to vector<8x64xf32>
    %42 = arith.subf %41, %33 : vector<8x64xf32>
    %43 = arith.mulf %42, %40 : vector<8x64xf32>
    %44 = arith.mulf %33, %15 : vector<8x64xf32>
    %45 = arith.addf %43, %44 : vector<8x64xf32>
    %46 = vector.extract_strided_slice %12 {offsets = [8, 0], sizes = [8, 384], strides = [1, 1]} : vector<64x384xf32> to vector<8x384xf32>
    %cst_15 = arith.constant dense<0.000000e+00> : vector<8x384xf32>
    %47 = tpu.matmul %45, %13, %cst_15 {dimension_numbers = #tpu.dot_dimension_numbers<[1], [0], [0], [1], [0, 0, 1, 1], [], []>} : vector<8x64xf32>, vector<64x384xf32>, vector<8x384xf32> -> vector<8x384xf32>
    %48 = vector.extract_strided_slice %46 {offsets = [0, 0], sizes = [8, 64], strides = [1, 1]} : vector<8x384xf32> to vector<8x64xf32>
    %49 = vector.extract_strided_slice %47 {offsets = [0, 0], sizes = [8, 64], strides = [1, 1]} : vector<8x384xf32> to vector<8x64xf32>
    %50 = arith.addf %48, %49 : vector<8x64xf32>
    %51 = arith.negf %50 : vector<8x64xf32>
    %52 = math.exp %51 : vector<8x64xf32>
    %cst_16 = arith.constant 1.000000e+00 : f32
    %53 = vector.broadcast %cst_16 : f32 to vector<8x64xf32>
    %54 = arith.addf %53, %52 : vector<8x64xf32>
    %55 = arith.divf %53, %54 : vector<8x64xf32>
    %56 = vector.extract_strided_slice %46 {offsets = [0, 128], sizes = [8, 64], strides = [1, 1]} : vector<8x384xf32> to vector<8x64xf32>
    %57 = vector.extract_strided_slice %47 {offsets = [0, 128], sizes = [8, 64], strides = [1, 1]} : vector<8x384xf32> to vector<8x64xf32>
    %58 = arith.addf %56, %57 : vector<8x64xf32>
    %59 = arith.negf %58 : vector<8x64xf32>
    %60 = math.exp %59 : vector<8x64xf32>
    %cst_17 = arith.constant 1.000000e+00 : f32
    %61 = vector.broadcast %cst_17 : f32 to vector<8x64xf32>
    %62 = arith.addf %61, %60 : vector<8x64xf32>
    %63 = arith.divf %61, %62 : vector<8x64xf32>
    %64 = vector.extract_strided_slice %46 {offsets = [0, 256], sizes = [8, 64], strides = [1, 1]} : vector<8x384xf32> to vector<8x64xf32>
    %65 = vector.extract_strided_slice %47 {offsets = [0, 256], sizes = [8, 64], strides = [1, 1]} : vector<8x384xf32> to vector<8x64xf32>
    %66 = vector.broadcast %14 : vector<1x64xf32> to vector<8x64xf32>
    %67 = arith.addf %65, %66 : vector<8x64xf32>
    %68 = arith.mulf %55, %67 : vector<8x64xf32>
    %69 = arith.addf %64, %68 : vector<8x64xf32>
    %70 = math.tanh %69 : vector<8x64xf32>
    %cst_18 = arith.constant 1.000000e+00 : f32
    %71 = vector.broadcast %cst_18 : f32 to vector<8x64xf32>
    %72 = arith.subf %71, %63 : vector<8x64xf32>
    %73 = arith.mulf %72, %70 : vector<8x64xf32>
    %74 = arith.mulf %63, %45 : vector<8x64xf32>
    %75 = arith.addf %73, %74 : vector<8x64xf32>
    %76 = vector.extract_strided_slice %12 {offsets = [16, 0], sizes = [8, 384], strides = [1, 1]} : vector<64x384xf32> to vector<8x384xf32>
    %cst_19 = arith.constant dense<0.000000e+00> : vector<8x384xf32>
    %77 = tpu.matmul %75, %13, %cst_19 {dimension_numbers = #tpu.dot_dimension_numbers<[1], [0], [0], [1], [0, 0, 1, 1], [], []>} : vector<8x64xf32>, vector<64x384xf32>, vector<8x384xf32> -> vector<8x384xf32>
    %78 = vector.extract_strided_slice %76 {offsets = [0, 0], sizes = [8, 64], strides = [1, 1]} : vector<8x384xf32> to vector<8x64xf32>
    %79 = vector.extract_strided_slice %77 {offsets = [0, 0], sizes = [8, 64], strides = [1, 1]} : vector<8x384xf32> to vector<8x64xf32>
    %80 = arith.addf %78, %79 : vector<8x64xf32>
    %81 = arith.negf %80 : vector<8x64xf32>
    %82 = math.exp %81 : vector<8x64xf32>
    %cst_20 = arith.constant 1.000000e+00 : f32
    %83 = vector.broadcast %cst_20 : f32 to vector<8x64xf32>
    %84 = arith.addf %83, %82 : vector<8x64xf32>
    %85 = arith.divf %83, %84 : vector<8x64xf32>
    %86 = vector.extract_strided_slice %76 {offsets = [0, 128], sizes = [8, 64], strides = [1, 1]} : vector<8x384xf32> to vector<8x64xf32>
    %87 = vector.extract_strided_slice %77 {offsets = [0, 128], sizes = [8, 64], strides = [1, 1]} : vector<8x384xf32> to vector<8x64xf32>
    %88 = arith.addf %86, %87 : vector<8x64xf32>
    %89 = arith.negf %88 : vector<8x64xf32>
    %90 = math.exp %89 : vector<8x64xf32>
    %cst_21 = arith.constant 1.000000e+00 : f32
    %91 = vector.broadcast %cst_21 : f32 to vector<8x64xf32>
    %92 = arith.addf %91, %90 : vector<8x64xf32>
    %93 = arith.divf %91, %92 : vector<8x64xf32>
    %94 = vector.extract_strided_slice %76 {offsets = [0, 256], sizes = [8, 64], strides = [1, 1]} : vector<8x384xf32> to vector<8x64xf32>
    %95 = vector.extract_strided_slice %77 {offsets = [0, 256], sizes = [8, 64], strides = [1, 1]} : vector<8x384xf32> to vector<8x64xf32>
    %96 = vector.broadcast %14 : vector<1x64xf32> to vector<8x64xf32>
    %97 = arith.addf %95, %96 : vector<8x64xf32>
    %98 = arith.mulf %85, %97 : vector<8x64xf32>
    %99 = arith.addf %94, %98 : vector<8x64xf32>
    %100 = math.tanh %99 : vector<8x64xf32>
    %cst_22 = arith.constant 1.000000e+00 : f32
    %101 = vector.broadcast %cst_22 : f32 to vector<8x64xf32>
    %102 = arith.subf %101, %93 : vector<8x64xf32>
    %103 = arith.mulf %102, %100 : vector<8x64xf32>
    %104 = arith.mulf %93, %75 : vector<8x64xf32>
    %105 = arith.addf %103, %104 : vector<8x64xf32>
    %106 = vector.extract_strided_slice %12 {offsets = [24, 0], sizes = [8, 384], strides = [1, 1]} : vector<64x384xf32> to vector<8x384xf32>
    %cst_23 = arith.constant dense<0.000000e+00> : vector<8x384xf32>
    %107 = tpu.matmul %105, %13, %cst_23 {dimension_numbers = #tpu.dot_dimension_numbers<[1], [0], [0], [1], [0, 0, 1, 1], [], []>} : vector<8x64xf32>, vector<64x384xf32>, vector<8x384xf32> -> vector<8x384xf32>
    %108 = vector.extract_strided_slice %106 {offsets = [0, 0], sizes = [8, 64], strides = [1, 1]} : vector<8x384xf32> to vector<8x64xf32>
    %109 = vector.extract_strided_slice %107 {offsets = [0, 0], sizes = [8, 64], strides = [1, 1]} : vector<8x384xf32> to vector<8x64xf32>
    %110 = arith.addf %108, %109 : vector<8x64xf32>
    %111 = arith.negf %110 : vector<8x64xf32>
    %112 = math.exp %111 : vector<8x64xf32>
    %cst_24 = arith.constant 1.000000e+00 : f32
    %113 = vector.broadcast %cst_24 : f32 to vector<8x64xf32>
    %114 = arith.addf %113, %112 : vector<8x64xf32>
    %115 = arith.divf %113, %114 : vector<8x64xf32>
    %116 = vector.extract_strided_slice %106 {offsets = [0, 128], sizes = [8, 64], strides = [1, 1]} : vector<8x384xf32> to vector<8x64xf32>
    %117 = vector.extract_strided_slice %107 {offsets = [0, 128], sizes = [8, 64], strides = [1, 1]} : vector<8x384xf32> to vector<8x64xf32>
    %118 = arith.addf %116, %117 : vector<8x64xf32>
    %119 = arith.negf %118 : vector<8x64xf32>
    %120 = math.exp %119 : vector<8x64xf32>
    %cst_25 = arith.constant 1.000000e+00 : f32
    %121 = vector.broadcast %cst_25 : f32 to vector<8x64xf32>
    %122 = arith.addf %121, %120 : vector<8x64xf32>
    %123 = arith.divf %121, %122 : vector<8x64xf32>
    %124 = vector.extract_strided_slice %106 {offsets = [0, 256], sizes = [8, 64], strides = [1, 1]} : vector<8x384xf32> to vector<8x64xf32>
    %125 = vector.extract_strided_slice %107 {offsets = [0, 256], sizes = [8, 64], strides = [1, 1]} : vector<8x384xf32> to vector<8x64xf32>
    %126 = vector.broadcast %14 : vector<1x64xf32> to vector<8x64xf32>
    %127 = arith.addf %125, %126 : vector<8x64xf32>
    %128 = arith.mulf %115, %127 : vector<8x64xf32>
    %129 = arith.addf %124, %128 : vector<8x64xf32>
    %130 = math.tanh %129 : vector<8x64xf32>
    %cst_26 = arith.constant 1.000000e+00 : f32
    %131 = vector.broadcast %cst_26 : f32 to vector<8x64xf32>
    %132 = arith.subf %131, %123 : vector<8x64xf32>
    %133 = arith.mulf %132, %130 : vector<8x64xf32>
    %134 = arith.mulf %123, %105 : vector<8x64xf32>
    %135 = arith.addf %133, %134 : vector<8x64xf32>
    %136 = vector.extract_strided_slice %12 {offsets = [32, 0], sizes = [8, 384], strides = [1, 1]} : vector<64x384xf32> to vector<8x384xf32>
    %cst_27 = arith.constant dense<0.000000e+00> : vector<8x384xf32>
    %137 = tpu.matmul %135, %13, %cst_27 {dimension_numbers = #tpu.dot_dimension_numbers<[1], [0], [0], [1], [0, 0, 1, 1], [], []>} : vector<8x64xf32>, vector<64x384xf32>, vector<8x384xf32> -> vector<8x384xf32>
    %138 = vector.extract_strided_slice %136 {offsets = [0, 0], sizes = [8, 64], strides = [1, 1]} : vector<8x384xf32> to vector<8x64xf32>
    %139 = vector.extract_strided_slice %137 {offsets = [0, 0], sizes = [8, 64], strides = [1, 1]} : vector<8x384xf32> to vector<8x64xf32>
    %140 = arith.addf %138, %139 : vector<8x64xf32>
    %141 = arith.negf %140 : vector<8x64xf32>
    %142 = math.exp %141 : vector<8x64xf32>
    %cst_28 = arith.constant 1.000000e+00 : f32
    %143 = vector.broadcast %cst_28 : f32 to vector<8x64xf32>
    %144 = arith.addf %143, %142 : vector<8x64xf32>
    %145 = arith.divf %143, %144 : vector<8x64xf32>
    %146 = vector.extract_strided_slice %136 {offsets = [0, 128], sizes = [8, 64], strides = [1, 1]} : vector<8x384xf32> to vector<8x64xf32>
    %147 = vector.extract_strided_slice %137 {offsets = [0, 128], sizes = [8, 64], strides = [1, 1]} : vector<8x384xf32> to vector<8x64xf32>
    %148 = arith.addf %146, %147 : vector<8x64xf32>
    %149 = arith.negf %148 : vector<8x64xf32>
    %150 = math.exp %149 : vector<8x64xf32>
    %cst_29 = arith.constant 1.000000e+00 : f32
    %151 = vector.broadcast %cst_29 : f32 to vector<8x64xf32>
    %152 = arith.addf %151, %150 : vector<8x64xf32>
    %153 = arith.divf %151, %152 : vector<8x64xf32>
    %154 = vector.extract_strided_slice %136 {offsets = [0, 256], sizes = [8, 64], strides = [1, 1]} : vector<8x384xf32> to vector<8x64xf32>
    %155 = vector.extract_strided_slice %137 {offsets = [0, 256], sizes = [8, 64], strides = [1, 1]} : vector<8x384xf32> to vector<8x64xf32>
    %156 = vector.broadcast %14 : vector<1x64xf32> to vector<8x64xf32>
    %157 = arith.addf %155, %156 : vector<8x64xf32>
    %158 = arith.mulf %145, %157 : vector<8x64xf32>
    %159 = arith.addf %154, %158 : vector<8x64xf32>
    %160 = math.tanh %159 : vector<8x64xf32>
    %cst_30 = arith.constant 1.000000e+00 : f32
    %161 = vector.broadcast %cst_30 : f32 to vector<8x64xf32>
    %162 = arith.subf %161, %153 : vector<8x64xf32>
    %163 = arith.mulf %162, %160 : vector<8x64xf32>
    %164 = arith.mulf %153, %135 : vector<8x64xf32>
    %165 = arith.addf %163, %164 : vector<8x64xf32>
    %166 = vector.extract_strided_slice %12 {offsets = [40, 0], sizes = [8, 384], strides = [1, 1]} : vector<64x384xf32> to vector<8x384xf32>
    %cst_31 = arith.constant dense<0.000000e+00> : vector<8x384xf32>
    %167 = tpu.matmul %165, %13, %cst_31 {dimension_numbers = #tpu.dot_dimension_numbers<[1], [0], [0], [1], [0, 0, 1, 1], [], []>} : vector<8x64xf32>, vector<64x384xf32>, vector<8x384xf32> -> vector<8x384xf32>
    %168 = vector.extract_strided_slice %166 {offsets = [0, 0], sizes = [8, 64], strides = [1, 1]} : vector<8x384xf32> to vector<8x64xf32>
    %169 = vector.extract_strided_slice %167 {offsets = [0, 0], sizes = [8, 64], strides = [1, 1]} : vector<8x384xf32> to vector<8x64xf32>
    %170 = arith.addf %168, %169 : vector<8x64xf32>
    %171 = arith.negf %170 : vector<8x64xf32>
    %172 = math.exp %171 : vector<8x64xf32>
    %cst_32 = arith.constant 1.000000e+00 : f32
    %173 = vector.broadcast %cst_32 : f32 to vector<8x64xf32>
    %174 = arith.addf %173, %172 : vector<8x64xf32>
    %175 = arith.divf %173, %174 : vector<8x64xf32>
    %176 = vector.extract_strided_slice %166 {offsets = [0, 128], sizes = [8, 64], strides = [1, 1]} : vector<8x384xf32> to vector<8x64xf32>
    %177 = vector.extract_strided_slice %167 {offsets = [0, 128], sizes = [8, 64], strides = [1, 1]} : vector<8x384xf32> to vector<8x64xf32>
    %178 = arith.addf %176, %177 : vector<8x64xf32>
    %179 = arith.negf %178 : vector<8x64xf32>
    %180 = math.exp %179 : vector<8x64xf32>
    %cst_33 = arith.constant 1.000000e+00 : f32
    %181 = vector.broadcast %cst_33 : f32 to vector<8x64xf32>
    %182 = arith.addf %181, %180 : vector<8x64xf32>
    %183 = arith.divf %181, %182 : vector<8x64xf32>
    %184 = vector.extract_strided_slice %166 {offsets = [0, 256], sizes = [8, 64], strides = [1, 1]} : vector<8x384xf32> to vector<8x64xf32>
    %185 = vector.extract_strided_slice %167 {offsets = [0, 256], sizes = [8, 64], strides = [1, 1]} : vector<8x384xf32> to vector<8x64xf32>
    %186 = vector.broadcast %14 : vector<1x64xf32> to vector<8x64xf32>
    %187 = arith.addf %185, %186 : vector<8x64xf32>
    %188 = arith.mulf %175, %187 : vector<8x64xf32>
    %189 = arith.addf %184, %188 : vector<8x64xf32>
    %190 = math.tanh %189 : vector<8x64xf32>
    %cst_34 = arith.constant 1.000000e+00 : f32
    %191 = vector.broadcast %cst_34 : f32 to vector<8x64xf32>
    %192 = arith.subf %191, %183 : vector<8x64xf32>
    %193 = arith.mulf %192, %190 : vector<8x64xf32>
    %194 = arith.mulf %183, %165 : vector<8x64xf32>
    %195 = arith.addf %193, %194 : vector<8x64xf32>
    %196 = vector.extract_strided_slice %12 {offsets = [48, 0], sizes = [8, 384], strides = [1, 1]} : vector<64x384xf32> to vector<8x384xf32>
    %cst_35 = arith.constant dense<0.000000e+00> : vector<8x384xf32>
    %197 = tpu.matmul %195, %13, %cst_35 {dimension_numbers = #tpu.dot_dimension_numbers<[1], [0], [0], [1], [0, 0, 1, 1], [], []>} : vector<8x64xf32>, vector<64x384xf32>, vector<8x384xf32> -> vector<8x384xf32>
    %198 = vector.extract_strided_slice %196 {offsets = [0, 0], sizes = [8, 64], strides = [1, 1]} : vector<8x384xf32> to vector<8x64xf32>
    %199 = vector.extract_strided_slice %197 {offsets = [0, 0], sizes = [8, 64], strides = [1, 1]} : vector<8x384xf32> to vector<8x64xf32>
    %200 = arith.addf %198, %199 : vector<8x64xf32>
    %201 = arith.negf %200 : vector<8x64xf32>
    %202 = math.exp %201 : vector<8x64xf32>
    %cst_36 = arith.constant 1.000000e+00 : f32
    %203 = vector.broadcast %cst_36 : f32 to vector<8x64xf32>
    %204 = arith.addf %203, %202 : vector<8x64xf32>
    %205 = arith.divf %203, %204 : vector<8x64xf32>
    %206 = vector.extract_strided_slice %196 {offsets = [0, 128], sizes = [8, 64], strides = [1, 1]} : vector<8x384xf32> to vector<8x64xf32>
    %207 = vector.extract_strided_slice %197 {offsets = [0, 128], sizes = [8, 64], strides = [1, 1]} : vector<8x384xf32> to vector<8x64xf32>
    %208 = arith.addf %206, %207 : vector<8x64xf32>
    %209 = arith.negf %208 : vector<8x64xf32>
    %210 = math.exp %209 : vector<8x64xf32>
    %cst_37 = arith.constant 1.000000e+00 : f32
    %211 = vector.broadcast %cst_37 : f32 to vector<8x64xf32>
    %212 = arith.addf %211, %210 : vector<8x64xf32>
    %213 = arith.divf %211, %212 : vector<8x64xf32>
    %214 = vector.extract_strided_slice %196 {offsets = [0, 256], sizes = [8, 64], strides = [1, 1]} : vector<8x384xf32> to vector<8x64xf32>
    %215 = vector.extract_strided_slice %197 {offsets = [0, 256], sizes = [8, 64], strides = [1, 1]} : vector<8x384xf32> to vector<8x64xf32>
    %216 = vector.broadcast %14 : vector<1x64xf32> to vector<8x64xf32>
    %217 = arith.addf %215, %216 : vector<8x64xf32>
    %218 = arith.mulf %205, %217 : vector<8x64xf32>
    %219 = arith.addf %214, %218 : vector<8x64xf32>
    %220 = math.tanh %219 : vector<8x64xf32>
    %cst_38 = arith.constant 1.000000e+00 : f32
    %221 = vector.broadcast %cst_38 : f32 to vector<8x64xf32>
    %222 = arith.subf %221, %213 : vector<8x64xf32>
    %223 = arith.mulf %222, %220 : vector<8x64xf32>
    %224 = arith.mulf %213, %195 : vector<8x64xf32>
    %225 = arith.addf %223, %224 : vector<8x64xf32>
    %226 = vector.extract_strided_slice %12 {offsets = [56, 0], sizes = [8, 384], strides = [1, 1]} : vector<64x384xf32> to vector<8x384xf32>
    %cst_39 = arith.constant dense<0.000000e+00> : vector<8x384xf32>
    %227 = tpu.matmul %225, %13, %cst_39 {dimension_numbers = #tpu.dot_dimension_numbers<[1], [0], [0], [1], [0, 0, 1, 1], [], []>} : vector<8x64xf32>, vector<64x384xf32>, vector<8x384xf32> -> vector<8x384xf32>
    %228 = vector.extract_strided_slice %226 {offsets = [0, 0], sizes = [8, 64], strides = [1, 1]} : vector<8x384xf32> to vector<8x64xf32>
    %229 = vector.extract_strided_slice %227 {offsets = [0, 0], sizes = [8, 64], strides = [1, 1]} : vector<8x384xf32> to vector<8x64xf32>
    %230 = arith.addf %228, %229 : vector<8x64xf32>
    %231 = arith.negf %230 : vector<8x64xf32>
    %232 = math.exp %231 : vector<8x64xf32>
    %cst_40 = arith.constant 1.000000e+00 : f32
    %233 = vector.broadcast %cst_40 : f32 to vector<8x64xf32>
    %234 = arith.addf %233, %232 : vector<8x64xf32>
    %235 = arith.divf %233, %234 : vector<8x64xf32>
    %236 = vector.extract_strided_slice %226 {offsets = [0, 128], sizes = [8, 64], strides = [1, 1]} : vector<8x384xf32> to vector<8x64xf32>
    %237 = vector.extract_strided_slice %227 {offsets = [0, 128], sizes = [8, 64], strides = [1, 1]} : vector<8x384xf32> to vector<8x64xf32>
    %238 = arith.addf %236, %237 : vector<8x64xf32>
    %239 = arith.negf %238 : vector<8x64xf32>
    %240 = math.exp %239 : vector<8x64xf32>
    %cst_41 = arith.constant 1.000000e+00 : f32
    %241 = vector.broadcast %cst_41 : f32 to vector<8x64xf32>
    %242 = arith.addf %241, %240 : vector<8x64xf32>
    %243 = arith.divf %241, %242 : vector<8x64xf32>
    %244 = vector.extract_strided_slice %226 {offsets = [0, 256], sizes = [8, 64], strides = [1, 1]} : vector<8x384xf32> to vector<8x64xf32>
    %245 = vector.extract_strided_slice %227 {offsets = [0, 256], sizes = [8, 64], strides = [1, 1]} : vector<8x384xf32> to vector<8x64xf32>
    %246 = vector.broadcast %14 : vector<1x64xf32> to vector<8x64xf32>
    %247 = arith.addf %245, %246 : vector<8x64xf32>
    %248 = arith.mulf %235, %247 : vector<8x64xf32>
    %249 = arith.addf %244, %248 : vector<8x64xf32>
    %250 = math.tanh %249 : vector<8x64xf32>
    %cst_42 = arith.constant 1.000000e+00 : f32
    %251 = vector.broadcast %cst_42 : f32 to vector<8x64xf32>
    %252 = arith.subf %251, %243 : vector<8x64xf32>
    %253 = arith.mulf %252, %250 : vector<8x64xf32>
    %254 = arith.mulf %243, %225 : vector<8x64xf32>
    %255 = arith.addf %253, %254 : vector<8x64xf32>
    %256 = tpu.concatenate %45, %75, %105, %135, %165, %195, %225, %255 in 0 : vector<8x64xf32>, vector<8x64xf32>, vector<8x64xf32>, vector<8x64xf32>, vector<8x64xf32>, vector<8x64xf32>, vector<8x64xf32>, vector<8x64xf32> -> vector<64x64xf32>
    %c152 = arith.constant 152 : index
    %c0_43 = arith.constant 0 : index
    %257 = vector.load %arg2[%c152, %c0_43] : memref<224x384xf32, #tpu.memory_space<vmem>>, vector<64x128xf32>
    %c219 = arith.constant 219 : index
    %c0_44 = arith.constant 0 : index
    %258 = vector.load %arg2[%c219, %c0_44] : memref<224x384xf32, #tpu.memory_space<vmem>>, vector<1x128xf32>
    %cst_45 = arith.constant dense<0.000000e+00> : vector<64x128xf32>
    %259 = tpu.matmul %256, %257, %cst_45 {dimension_numbers = #tpu.dot_dimension_numbers<[1], [0], [0], [1], [0, 0, 1, 1], [], []>} : vector<64x64xf32>, vector<64x128xf32>, vector<64x128xf32> -> vector<64x128xf32>
    %260 = vector.broadcast %258 : vector<1x128xf32> to vector<64x128xf32>
    %261 = arith.addf %259, %260 : vector<64x128xf32>
    %c0_46 = arith.constant 0 : index
    %c0_47 = arith.constant 0 : index
    %262 = vector.load %arg3[%c0_46, %c0_47] : memref<64x128xf32, #tpu.memory_space<vmem>>, vector<64x128xf32>
    tpu.vector_store %arg3[%c0_46, %c0_47], %261 {strides = array<i32>} : memref<64x128xf32, #tpu.memory_space<vmem>>, vector<64x128xf32>,
    return
  }
  func.func @transform_0(%arg0: i32) -> (i32, i32) {
    %c0_i32 = arith.constant 0 : i32
    %c0_i32_0 = arith.constant 0 : i32
    %c0_i32_1 = arith.constant 0 : i32
    return %c0_i32, %c0_i32_0 : i32, i32
  }
  func.func @transform_1(%arg0: i32) -> (i32, i32) {
    %c0_i32 = arith.constant 0 : i32
    %c0_i32_0 = arith.constant 0 : i32
    %c0_i32_1 = arith.constant 0 : i32
    return %c0_i32, %c0_i32_0 : i32, i32
  }
  func.func @transform_2(%arg0: i32) -> (i32, i32) {
    %c0_i32 = arith.constant 0 : i32
    %c0_i32_0 = arith.constant 0 : i32
    %c0_i32_1 = arith.constant 0 : i32
    return %c0_i32, %c0_i32_0 : i32, i32
  }
}

</mosaic_0001>

<bundles_post_ra>
// kernel: fop_critic_forward.1
= control target key start
LH: loop header
LB: loop body
LE: loop exit
PB: predicated region body
PF: predicated region fallthrough
CT: control target
= control target key end

     0   :  { %7 = vsyncpa [#allocation3], 0  ;;  %s2464_s9 = smov [#allocation2]   ;;  %s3033_s0 = inlined_call_operand.vmem [shape: f32[64,24], index: 0, kind: input, shape index: {}]   ;;  %s3034_s1 = inlined_call_operand.hbm [shape: f32[224,384], index: 1, kind: input, shape index: {}]   ;;  %s3035_s2 = inlined_call_operand.vmem [shape: f32[64,128], index: 2, kind: output, shape index: {}]  }
   0x1   :  { %s15_s10 = sshll.u32 %s2464_s9, 4  ;;  %s16_s10 = int_to_ptr.vmem [resolvable:$true] %s15_s10 }
   0x2   :  { %s2450_s11 = scalar_lea.vmem %s16_s10, 10752  ;;  %p2455_p1 = scmp.lt.s32.totalorder %s16_s10, %s16_s10 }
   0x3   :  { %p2451_p0 = scmp.ne.s32.totalorder %s16_s10, %s2450_s11  ;;  %p2456_p2 = scmp.lt.s32.totalorder %s2450_s11, %s2450_s11 }
   0x5   :  { %p2457_p3 = por %p2456_p2, %p2455_p1 }
   0x7   :  { %p2458_p4 = pnand %p2457_p3, %p2451_p0 }
   0x9   :  { %2461 = shalt.err (!%p2458_p4)
}
   0xa   :  { %s2465_s12 = smov 384   ;;  %s2466_s13 = smov 24  }
   0xb   :  { %21 = dma.hbm_to_vmem [thread:$0]  %s3034_s1, 10752, %s16_s10, [#allocation3], %s2465_s12, %s2465_s12, %s2466_s13  }
   0xc   :  { %2462 = dma.done.wait [#allocation3], 10752  }
   0xd   :  { %2463 = vsyncadd [#allocation3], 4294956544  ;;  %vm37_vm0 = vcmask 195584   ;;  %v35_v0 = vld [vmem:[#allocation2 + $0x30] sm:$0xff]  ;;  %v34_v1 = vld [vmem:[#allocation2 + $0x18] sm:$0xff]  ;;  %v2467_v35 = vmov 0.0  }
   0xe   :  { %2120 = vmatprep.subr.mxu1 %v35_v0  ;;  %v25_v2 = vld [vmem:[%s3033_s0] sm:$0xff]  ;;  %v26_v4 = vld [vmem:[%s3033_s0 + $0x8] sm:$0xff]  ;;  %v197_v5 = vld [vmem:[#allocation2 + $0xf8] sm:$0xff]  ;;  %vm217_vm1 = vcmask 523264   ;;  %vm2468_vm2 = vmmov 0  }
   0xf   :  { %2121 = vmatpush3.msra.mxu1 %v35_v0  ;;  %v33_v3 = vld [vmem:[#allocation2] sm:$0xff]  ;;  %2126 = vmatprep.mubr.msk.f32.mxu1 %vm37_vm0, %v25_v2  ;;  %v27_v7 = vld [vmem:[%s3033_s0 + $0x10] sm:$0xff]  ;;  %v195_v10 = vld [vmem:[#allocation2 + $0xe8] sm:$0xff] }
  0x10   :  { %2122 = vmatprep.subr.mxu1 %v34_v1  ;;  %v198_v6 = vld [vmem:[#allocation2 + $0x100] sm:$0xff]  ;;  %v196_v8 = vld [vmem:[#allocation2 + $0xf0] sm:$0xff]  ;;  %v193_v11 = vld [vmem:[#allocation2 + $0xd8] sm:$0xff] }
  0x11   :  { %2123 = vmatpush3.msra.mxu1 %v34_v1  ;;  %2138 = vmatprep.subr.mxu0 %v198_v6  ;;  %v194_v9 = vld [vmem:[#allocation2 + $0xe0] sm:$0xff]  ;;  %v28_v12 = vld [vmem:[%s3033_s0 + $0x18] sm:$0xff]  ;;  %v191_v13 = vld [vmem:[#allocation2 + $0xc8] sm:$0xff] }
  0x12   :  { %2124 = vmatprep.subr.mxu1 %v33_v3  ;;  %2139 = vmatpush3.msra.mxu0 %v198_v6  ;;  %v29_v14 = vld [vmem:[%s3033_s0 + $0x20] sm:$0xff]  ;;  %v192_v15 = vld [vmem:[#allocation2 + $0xd0] sm:$0xff]  ;;  %v189_v18 = vld [vmem:[#allocation2 + $0xb8] sm:$0xff] }
  0x13   :  { %2125 = vmatpush3.msra.mxu1 %v33_v3  ;;  %2140 = vmatprep.subr.mxu0 %v195_v10  ;;  %v190_v16 = vld [vmem:[#allocation2 + $0xc0] sm:$0xff]  ;;  %v188_v17 = vld [vmem:[#allocation2 + $0xb0] sm:$0xff]  ;;  %v30_v19 = vld [vmem:[%s3033_s0 + $0x28] sm:$0xff] }
  0x14   :  { %2127 = vmatmul.mubr.msk.f32.vlgmr.msra.gmra.mxu1 %vm37_vm0, %v26_v4  ;;  %258 = vmatprep.subr.mxu1 %v197_v5  ;;  %v31_v20 = vld [vmem:[%s3033_s0 + $0x30] sm:$0xff]  ;;  %v187_v21 = vld [vmem:[#allocation2 + $0xa8] sm:$0xff]  ;;  %v185_v22 = vld [vmem:[#allocation2 + $0x98] sm:$0xff] }
  0x15   :  { %2129 = vmatprep.mubr.msk.f32.mxu1 %vm37_vm0, %v27_v7  ;;  %259 = vmatpush1.msra.mxu1 %v196_v8  ;;  %v186_v23 = vld [vmem:[#allocation2 + $0xa0] sm:$0xff]  ;;  %v32_v24 = vld [vmem:[%s3033_s0 + $0x38] sm:$0xff]  ;;  %v184_v25 = vld [vmem:[#allocation2 + $0x90] sm:$0xff] }
  0x16   :  { %260 = vmatprep.subr.mxu1 %v194_v9  ;;  %2141 = vmatpush3.msra.mxu0 %v195_v10  ;;  %v182_v26 = vld [vmem:[#allocation2 + $0x80] sm:$0xff]  ;;  %v183_v27 = vld [vmem:[#allocation2 + $0x88] sm:$0xff]  ;;  %v181_v28 = vld [vmem:[#allocation2 + $0x78] sm:$0xff] }
  0x17   :  { %261 = vmatpush1.msra.mxu1 %v193_v11  ;;  %2142 = vmatprep.subr.mxu0 %v192_v15  ;;  %v179_v29 = vld [vmem:[#allocation2 + $0x68] sm:$0xff]  ;;  %v180_v30 = vld [vmem:[#allocation2 + $0x70] sm:$0xff]  ;;  %v178_v31 = vld [vmem:[#allocation2 + $0x60] sm:$0xff] }
  0x18   :  { %2130 = vmatmul.mubr.msk.f32.gmra.mxu1 %vm37_vm0, %v28_v12  ;;  %262 = vmatprep.subr.mxu1 %v191_v13  ;;  %v176_v32 = vld [vmem:[#allocation2 + $0x50] sm:$0xff]  ;;  %v177_v33 = vld [vmem:[#allocation2 + $0x58] sm:$0xff]  ;;  %v175_v34 = vld [vmem:[#allocation2 + $0x48] sm:$0xff] }
  0x19   :  { %2132 = vmatprep.mubr.msk.f32.mxu1 %vm37_vm0, %v29_v14  ;;  %263 = vmatpush1.msra.mxu1 %v190_v16  ;;  %v2520_v36 = vld [vmem:[#allocation2 + $0x1b8] sm:$0xff]  ;;  %v36_v37 = vld [vmem:[#allocation2 + $0x288] ss:$0 sm:$0xff]  ;;  %v2524_v46 = vld [vmem:[#allocation2 + $0x1b0] sm:$0xff] }
  0x1a   :  { %2143 = vmatpush3.msra.mxu0 %v192_v15  ;;  %264 = vmatprep.subr.mxu1 %v188_v17  ;;  %v2526_v47 = vld [vmem:[#allocation2 + $0x1c0] sm:$0xff]  ;;  %v2534_v52 = vld [vmem:[#allocation2 + $0x198] sm:$0xff]  ;;  %v2537_v54 = vld [vmem:[#allocation2 + $0x188] sm:$0xff] }
  0x1b   :  { %2144 = vmatprep.subr.mxu0 %v189_v18  ;;  %265 = vmatpush1.msra.mxu1 %v187_v21  ;;  %v2530_v50 = vld [vmem:[#allocation2 + $0x1a0] sm:$0xff]  ;;  %v2546_v60 = vld [vmem:[#allocation2 + $0x1a8] sm:$0xff]  ;;  %v2550_v62 = vld [vmem:[#allocation2 + $0x170] sm:$0xff]  ;;  %v202_v21 = vlaneseq }
  0x1c   :  { %2133 = vmatmul.mubr.msk.f32.gmra.mxu1 %vm37_vm0, %v30_v19  ;;  %2145 = vmatpush3.msra.mxu0 %v189_v18  ;;  %v2544_v59 = vld [vmem:[#allocation2 + $0x180] sm:$0xff]  ;;  %v2554_v0 = vld [vmem:[#allocation2 + $0x168] sm:$0xff]  ;;  %v2557_v2 = vld [vmem:[#allocation2 + $0x158] sm:$0xff] }
  0x1d   :  { %2135 = vmatprep.mubr.msk.f32.mxu1 %vm37_vm0, %v31_v20  ;;  %266 = vmatprep.subr.mxu1 %v185_v22  ;;  %v2562_v6 = vld [vmem:[#allocation2 + $0x150] sm:$0xff]  ;;  %v2566_v7 = vld [vmem:[#allocation2 + $0x140] sm:$0xff]  ;;  %v2570_v9 = vld [vmem:[#allocation2 + $0x138] sm:$0xff]  ;;  %v203_v22 = vshrl.u32 %v202_v21, 7 }
  0x1e   :  { %2146 = vmatprep.subr.mxu0 %v186_v23  ;;  %267 = vmatpush1.msra.mxu1 %v184_v25  ;;  %v2574_v10 = vld [vmem:[#allocation2 + $0x128] sm:$0xff]  ;;  %v2578_v12 = vld [vmem:[#allocation2 + $0x120] sm:$0xff]  ;;  %v2582_v13 = vld [vmem:[#allocation2 + $0x110] sm:$0xff] }
  0x1f   :  { %2147 = vmatpush3.msra.mxu0 %v186_v23  ;;  %268 = vmatprep.subr.mxu1 %v182_v26  ;;  %v2586_v14 = vld [vmem:[#allocation2 + $0x108] sm:$0xff]  ;;  %v2596_v15 = vld [vmem:[#allocation2 + $0x190] sm:$0xff]  ;;  %v2601_v16 = vld [vmem:[#allocation2 + $0x178] sm:$0xff]  ;;  %v212_v23 = vsub.s32 2, %v203_v22  ;;  %v204_v26 = vsub.s32 0, %v203_v22 }
  0x20   :  { %2136 = vmatmul.mubr.msk.f32.gmra.mxu1 %vm37_vm0, %v32_v24  ;;  %2148 = vmatprep.subr.mxu0 %v183_v27  ;;  %v2607_v17 = vld [vmem:[#allocation2 + $0x160] sm:$0xff]  ;;  %v2614_v18 = vld [vmem:[#allocation2 + $0x148] sm:$0xff]  ;;  %v2619_v19 = vld [vmem:[#allocation2 + $0x130] sm:$0xff] }
  0x21   :  { %269 = vmatpush1.msra.mxu1 %v181_v28  ;;  %2149 = vmatpush3.msra.mxu0 %v183_v27  ;;  %v2626_v20 = vld [vmem:[#allocation2 + $0x118] sm:$0xff] }
  0x22   :  { %270 = vmatprep.subr.mxu1 %v179_v29  ;;  %2150 = vmatprep.subr.mxu0 %v180_v30  ;;  %v200_v24 = vld [vmem:[#allocation2 + $0x289] ss:$8 sm:$0x7]  ;;  %v208_v29 = vsub.s32 1, %v203_v22 }
  0x23   :  { %271 = vmatpush1.msra.mxu1 %v178_v31  ;;  %2151 = vmatpush3.msra.mxu0 %v180_v30  ;;  %v2665_v25 = vrot.slane %v200_v24, %v212_v23 }
  0x24   :  { %272 = vmatprep.subr.mxu1 %v176_v32  ;;  %2152 = vmatprep.subr.mxu0 %v177_v33  ;;  %v205_v32 = vrot.slane %v200_v24, %v204_v26 }
  0x25   :  { %273 = vmatpush1.msra.mxu1 %v175_v34  ;;  %306 = vmatprep.mubr.f32.mxu1 %v2467_v35 }
  0x26   :  { %2153 = vmatpush3.msra.mxu0 %v177_v33  ;;  %2166 = vmatprep.subr.mxu1 %v2467_v35 }
  0x27   :  { %504 = vmatprep.subr.mxu0 %v2520_v36 }
  0xd4   :  { %v2128_v38 = vpop.f32.mrf.mxu1 }
  0xd5   :  { %v134_v39 = vadd.f32 %v2128_v38, %v36_v37 }
  0xd6   :  { %v128_v40 = vpop.f32.mrf.mxu1 }
  0xd7   :  { %v129_v41 = vadd.f32 %v128_v40, %v36_v37  ;;  %v168_v44 = vmax.f32 %v134_v39, 0.0 }
  0xd8   :  { %v2131_v42 = vpop.f32.mrf.mxu1 }
  0xd9   :  { %v167_v43 = vmax.f32 %v129_v41, 0.0  ;;  %v144_v48 = vadd.f32 %v2131_v42, %v36_v37 }
  0xda   :  { %v138_v45 = vpop.f32.mrf.mxu1 }
  0xdb   :  { %v139_v49 = vadd.f32 %v138_v45, %v36_v37  ;;  %1951 = vmatmul.mubr.msk.f32.vlgmr.msra.gmra.mxu1 %vm217_vm1, %v167_v43  ;;  %2154 = vmatprep.mubr.msk.f32.mxu0 %vm217_vm1, %v167_v43  ;;  %v170_v56 = vmax.f32 %v144_v48, 0.0 }
  0xdc   :  { %v2134_v51 = vpop.f32.mrf.mxu1  ;;  %2155 = vmatmul.mubr.msk.f32.vlgmr.msra.gmra.mxu0 %vm217_vm1, %v168_v44  ;;  %312 = vmatprep.mubr.f32.mxu1 %v2467_v35 }
  0xdd   :  { %v169_v53 = vmax.f32 %v139_v49, 0.0  ;;  %505 = vmatpush1.msra.mxu0 %v2524_v46  ;;  %2167 = vmatpush3.msra.mxu1 %v2526_v47  ;;  %v154_v57 = vadd.f32 %v2134_v51, %v36_v37 }
  0xde   :  { %506 = vmatprep.subr.mxu0 %v2530_v50  ;;  %v148_v55 = vpop.f32.mrf.mxu1  ;;  %2168 = vmatprep.subr.mxu1 %v2467_v35 }
  0xdf   :  { %v149_v58 = vadd.f32 %v148_v55, %v36_v37  ;;  %507 = vmatpush1.msra.mxu0 %v2534_v52  ;;  %1952 = vmatmul.mubr.msk.f32.gmra.mxu1 %vm217_vm1, %v168_v44  ;;  %v172_v3 = vmax.f32 %v154_v57, 0.0 }
  0xe0   :  { %2157 = vmatprep.mubr.msk.f32.mxu0 %vm217_vm1, %v169_v53  ;;  %508 = vmatprep.subr.mxu0 %v2537_v54  ;;  %v2137_v61 = vpop.f32.mrf.mxu1 }
  0xe1   :  { %v171_v63 = vmax.f32 %v149_v58, 0.0  ;;  %2158 = vmatmul.mubr.msk.f32.gmra.mxu0 %vm217_vm1, %v170_v56  ;;  %318 = vmatprep.mubr.f32.mxu1 %v2467_v35  ;;  %v164_v4 = vadd.f32 %v2137_v61, %v36_v37 }
  0xe2   :  { %509 = vmatpush1.msra.mxu0 %v2544_v59  ;;  %v158_v1 = vpop.f32.mrf.mxu1  ;;  %2169 = vmatpush3.msra.mxu1 %v2546_v60 }
  0xe3   :  { %510 = vmatprep.subr.mxu0 %v2550_v62  ;;  %v159_v5 = vadd.f32 %v158_v1, %v36_v37  ;;  %1953 = vmatmul.mubr.msk.f32.gmra.mxu1 %vm217_vm1, %v169_v53  ;;  %v174_v11 = vmax.f32 %v164_v4, 0.0  ;;  %v209_v37 = vrot.slane %v200_v24, %v208_v29 }
  0xe4   :  { %511 = vmatpush1.msra.mxu0 %v2554_v0  ;;  %2160 = vmatprep.mubr.msk.f32.mxu0 %vm217_vm1, %v171_v63 }
  0xe5   :  { %v173_v8 = vmax.f32 %v159_v5, 0.0  ;;  %512 = vmatprep.subr.mxu0 %v2557_v2  ;;  %2161 = vmatmul.mubr.msk.f32.gmra.mxu0 %vm217_vm1, %v172_v3 }
  0xe6   :  { %513 = vmatpush1.msra.mxu0 %v2562_v6  ;;  %324 = vmatprep.mubr.f32.mxu1 %v2467_v35 }
  0xe7   :  { %514 = vmatprep.subr.mxu0 %v2566_v7  ;;  %1954 = vmatmul.mubr.msk.f32.gmra.mxu1 %vm217_vm1, %v170_v56 }
  0xe8   :  { %515 = vmatpush1.msra.mxu0 %v2570_v9  ;;  %2163 = vmatprep.mubr.msk.f32.mxu0 %vm217_vm1, %v173_v8 }
  0xe9   :  { %516 = vmatprep.subr.mxu0 %v2574_v10  ;;  %2164 = vmatmul.mubr.msk.f32.gmra.mxu0 %vm217_vm1, %v174_v11 }
  0xea   :  { %517 = vmatpush1.msra.mxu0 %v2578_v12  ;;  %330 = vmatprep.mubr.f32.mxu1 %v2467_v35 }
  0xeb   :  { %518 = vmatprep.subr.mxu0 %v2582_v13  ;;  %1955 = vmatmul.mubr.msk.f32.gmra.mxu1 %vm217_vm1, %v171_v63 }
  0xec   :  { %519 = vmatpush1.msra.mxu0 %v2586_v14  ;;  %552 = vmatprep.mubr.f32.mxu0 %v2467_v35 }
  0xed   :  { %553 = vmatmul.mubr.f32.vlgmr.msra.gmra.mxu0 %v2467_v35  ;;  %336 = vmatprep.mubr.f32.mxu1 %v2467_v35 }
  0xee   :  { %2170 = vmatprep.subr.mxu1 %v2467_v35  ;;  %670 = vmatprep.subr.mxu0 %v2520_v36 }
  0xef   :  { %1956 = vmatmul.mubr.msk.f32.gmra.mxu1 %vm217_vm1, %v172_v3  ;;  %671 = vmatpush1.msra.mxu0 %v2524_v46 }
  0xf0   :  { %342 = vmatprep.mubr.f32.mxu1 %v2467_v35  ;;  %2171 = vmatpush3.msra.mxu1 %v2596_v15 }
  0xf1   :  { %2172 = vmatprep.subr.mxu1 %v2467_v35  ;;  %672 = vmatprep.subr.mxu0 %v2530_v50 }
  0xf2   :  { %2173 = vmatpush3.msra.mxu1 %v2601_v16  ;;  %673 = vmatpush1.msra.mxu0 %v2534_v52 }
  0xf3   :  { %1957 = vmatmul.mubr.msk.f32.gmra.mxu1 %vm217_vm1, %v173_v8  ;;  %2174 = vmatprep.subr.mxu1 %v2467_v35 }
  0xf4   :  { %348 = vmatprep.mubr.f32.mxu1 %v2467_v35  ;;  %2175 = vmatpush3.msra.mxu1 %v2607_v17 }
  0xf5   :  { %2176 = vmatprep.subr.mxu1 %v2467_v35  ;;  %674 = vmatprep.subr.mxu0 %v2537_v54 }
  0xf6   :  { %2177 = vmatpush3.msra.mxu1 %v2614_v18  ;;  %675 = vmatpush1.msra.mxu0 %v2544_v59 }
  0xf7   :  { %1958 = vmatmul.mubr.msk.f32.gmra.mxu1 %vm217_vm1, %v174_v11  ;;  %2178 = vmatprep.subr.mxu1 %v2467_v35 }
  0xf8   :  { %2179 = vmatpush3.msra.mxu1 %v2619_v19  ;;  %2182 = vmatprep.mubr.msk.f32.mxu1 %vm2468_vm2, %v2467_v35 }
  0xf9   :  { %2180 = vmatprep.subr.mxu1 %v2467_v35  ;;  %676 = vmatprep.subr.mxu0 %v2550_v62 }
  0xfa   :  { %2181 = vmatpush3.msra.mxu1 %v2626_v20  ;;  %677 = vmatpush1.msra.mxu0 %v2554_v0 }
  0xfb   :  { %2183 = vmatmul.mubr.f32.vlgmr.msra.gmra.mxu1 %v2467_v35  ;;  %2185 = vmatprep.subr.mxu1 %v2467_v35 }
  0xfc   :  { %2186 = vmatpush3.msra.mxu1 %v2526_v47  ;;  %678 = vmatprep.subr.mxu0 %v2557_v2 }
  0xfd   :  { %2187 = vmatprep.subr.mxu1 %v2467_v35  ;;  %679 = vmatpush1.msra.mxu0 %v2562_v6 }
  0xfe   :  { %2188 = vmatpush3.msra.mxu1 %v2546_v60  ;;  %680 = vmatprep.subr.mxu0 %v2566_v7 }
  0xff   :  { %2189 = vmatprep.subr.mxu1 %v2467_v35  ;;  %681 = vmatpush1.msra.mxu0 %v2570_v9 }
 0x100   :  { %2190 = vmatpush3.msra.mxu1 %v2596_v15  ;;  %682 = vmatprep.subr.mxu0 %v2574_v10 }
 0x101   :  { %2191 = vmatprep.subr.mxu1 %v2467_v35  ;;  %683 = vmatpush1.msra.mxu0 %v2578_v12 }
 0x102   :  { %2192 = vmatpush3.msra.mxu1 %v2601_v16  ;;  %684 = vmatprep.subr.mxu0 %v2582_v13 }
 0x103   :  { %2193 = vmatprep.subr.mxu1 %v2467_v35  ;;  %685 = vmatpush1.msra.mxu0 %v2586_v14 }
 0x104   :  { %2194 = vmatpush3.msra.mxu1 %v2607_v17  ;;  %718 = vmatprep.mubr.f32.mxu0 %v2467_v35 }
 0x105   :  { %2195 = vmatprep.subr.mxu1 %v2467_v35  ;;  %2201 = vmatprep.mubr.msk.f32.mxu1 %vm2468_vm2, %v2467_v35 }
 0x106   :  { %2196 = vmatpush3.msra.mxu1 %v2614_v18  ;;  %836 = vmatprep.subr.mxu0 %v2520_v36 }
 0x107   :  { %2197 = vmatprep.subr.mxu1 %v2467_v35 }
 0x108   :  { %2198 = vmatpush3.msra.mxu1 %v2619_v19 }
 0x109   :  { %2199 = vmatprep.subr.mxu1 %v2467_v35 }
 0x10a   :  { %2200 = vmatpush3.msra.mxu1 %v2626_v20 }
 0x10b   :  { %2204 = vmatprep.subr.mxu1 %v2467_v35 }
 0x19b   :  { %v308_v27 = vpop.f32.mrf.mxu1 }
 0x19c   :  { %v2156_v28 = vpop.f32.mrf.mxu0  ;;  %v309_v11 = vadd.f32 %v308_v27, %v205_v32 }
 0x19d   :  { %v2668_v30 = vadd.f32 %v2156_v28, %v2665_v25  ;;  %v310_v31 = vpop.f32.mrf.mxu1 }
 0x19e   :  { %v421_v33 = vpop.f32.mrf.mxu0 }
 0x19f   :  { %v314_v34 = vpop.f32.mrf.mxu1 }
 0x1a0   :  { %v2670_v38 = vadd.f32 %v314_v34, %v205_v32 }
 0x1a1   :  { %v2159_v39 = vpop.f32.mrf.mxu0  ;;  %v316_v40 = vpop.f32.mrf.mxu1 }
 0x1a2   :  { %v2673_v41 = vadd.f32 %v2159_v39, %v2665_v25  ;;  %v2675_v42 = vadd.f32 %v316_v40, %v209_v37 }
 0x1a3   :  { %v431_v43 = vpop.f32.mrf.mxu0  ;;  %v320_v44 = vpop.f32.mrf.mxu1 }
 0x1a4   :  { %v2678_v45 = vadd.f32 %v431_v43, %v2665_v25  ;;  %v2680_v48 = vadd.f32 %v320_v44, %v205_v32  ;;  %v311_v44 = vadd.f32 %v310_v31, %v209_v37 }
 0x1a5   :  { %v2162_v49 = vpop.f32.mrf.mxu0  ;;  %v322_v51 = vpop.f32.mrf.mxu1 }
 0x1a6   :  { %v2683_v53 = vadd.f32 %v2162_v49, %v2665_v25  ;;  %v2685_v55 = vadd.f32 %v322_v51, %v209_v37 }
 0x1a7   :  { %v441_v56 = vpop.f32.mrf.mxu0  ;;  %v326_v57 = vpop.f32.mrf.mxu1 }
 0x1a8   :  { %v2688_v58 = vadd.f32 %v441_v56, %v2665_v25  ;;  %v2690_v61 = vadd.f32 %v326_v57, %v205_v32 }
 0x1a9   :  { %v2165_v63 = vpop.f32.mrf.mxu0  ;;  %v328_v1 = vpop.f32.mrf.mxu1 }
 0x1aa   :  { %v2693_v3 = vadd.f32 %v2165_v63, %v2665_v25  ;;  %v2695_v4 = vadd.f32 %v328_v1, %v209_v37 }
 0x1ab   :  { %v451_v5 = vpop.f32.mrf.mxu0  ;;  %v332_v8 = vpop.f32.mrf.mxu1 }
 0x1ac   :  { %v2698_v21 = vadd.f32 %v451_v5, %v2665_v25  ;;  %v2700_v22 = vadd.f32 %v332_v8, %v205_v32 }
 0x1ad   :  { %v554_v23 = vpop.f32.mrf.mxu0  ;;  %v334_v24 = vpop.f32.mrf.mxu1 }
 0x1ae   :  { %v629_v26 = vadd.f32 %v554_v23, %v309_v11  ;;  %v2702_v28 = vadd.f32 %v334_v24, %v209_v37 }
 0x1af   :  { %v338_v29 = vpop.f32.mrf.mxu1  ;;  %v556_v40 = vpop.f32.mrf.mxu0 }
 0x1b0   :  { %v1967_v34 = vmul.f32 -1.442695, %v629_v26  ;;  %v2704_v39 = vadd.f32 %v338_v29, %v205_v32  ;;  %v636_v51 = vadd.f32 %v556_v40, %v311_v44  ;;  %v2716_v40 = vld [vmem:[#allocation2 + $0x28a] ss:$0 sm:$0xff] }
 0x1b1   :  { %v340_v43 = vpop.f32.mrf.mxu1 }
 0x1b2   :  { %2351 = vpow2.f32 %v1967_v34  ;;  %v2706_v49 = vadd.f32 %v340_v43, %v209_v37  ;;  %v1968_v5 = vmul.f32 -1.442695, %v636_v51  ;;  %v422_v51 = vadd.f32 %v421_v33, %v2665_v25 }
 0x1b3   :  { %v344_v27 = vpop.f32.mrf.mxu1 }
 0x1b4   :  { %v2708_v56 = vadd.f32 %v344_v27, %v205_v32  ;;  %2353 = vpow2.f32 %v1968_v5 }
 0x1b5   :  { %v346_v57 = vpop.f32.mrf.mxu1 }
 0x1b6   :  { %v2710_v63 = vadd.f32 %v346_v57, %v209_v37 }
 0x1b7   :  { %v350_v1 = vpop.f32.mrf.mxu1 }
 0x1b8   :  { %v2712_v8 = vadd.f32 %v350_v1, %v205_v32 }
 0x1b9   :  { %v352_v11 = vpop.f32.mrf.mxu1 }
 0x1ba   :  { %v2714_v23 = vadd.f32 %v352_v11, %v209_v37 }
 0x1bb   :  { %v625_v24 = vpop.f32.mrf.mxu1 }
 0x1bc   :  { %v643_v44 = vadd.f32 %v625_v24, %v2716_v40 }
 0x1bd   :  { %v2184_v31 = vpop.f32.mrf.mxu1 }
 0x1bf   :  { %v2352_v26 = vpop.eup %2351 }
 0x1c0   :  { %v633_v29 = vadd.f32 1.0, %v2352_v26 }
 0x1c1   :  { %v2354_v34 = vpop.eup %2353 }
 0x1c2   :  { %2355 = vrcp.f32 %v633_v29  ;;  %v640_v43 = vadd.f32 1.0, %v2354_v34 }
 0x1c4   :  { %2357 = vrcp.f32 %v640_v43 }
 0x1cf   :  { %v2356_v27 = vpop.eup %2355 }
 0x1d0   :  { %v644_v32 = vmul.f32 %v2356_v27, %v643_v44 }
 0x1d1   :  { %v2358_v37 = vpop.eup %2357 }
 0x1d2   :  { %v645_v57 = vadd.f32 %v644_v32, %v422_v51  ;;  %v647_v1 = vsub.f32 1.0, %v2358_v37  ;;  %v649_v31 = vmul.f32 0.0, %v2358_v37 }
 0x1d4   :  { %2359 = vtanh.f32 %v645_v57 }
 0x1e1   :  { %v2360_v5 = vpop.eup %2359 }
 0x1e2   :  { %v648_v11 = vmul.f32 %v2360_v5, %v647_v1 }
 0x1e4   :  { %v2720_v26 = vadd.f32 %v649_v31, %v648_v11 }
 0x1e6   :  { %1969 = vmatmul.mubr.msk.f32.vlgmr.msra.gmra.mxu0 %vm217_vm1, %v2720_v26  ;;  %2202 = vmatmul.mubr.msk.f32.vlgmr.msra.gmra.mxu1 %vm217_vm1, %v2720_v26 }
 0x1e7   :  { %837 = vmatpush1.msra.mxu0 %v2524_v46  ;;  %2205 = vmatpush3.msra.mxu1 %v2526_v47 }
 0x1e8   :  { %838 = vmatprep.subr.mxu0 %v2530_v50  ;;  %2206 = vmatprep.subr.mxu1 %v2467_v35 }
 0x1e9   :  { %839 = vmatpush1.msra.mxu0 %v2534_v52  ;;  %2207 = vmatpush3.msra.mxu1 %v2546_v60 }
 0x1ea   :  { %840 = vmatprep.subr.mxu0 %v2537_v54  ;;  %2208 = vmatprep.subr.mxu1 %v2467_v35 }
 0x1eb   :  { %841 = vmatpush1.msra.mxu0 %v2544_v59  ;;  %2209 = vmatpush3.msra.mxu1 %v2596_v15 }
 0x1ec   :  { %842 = vmatprep.subr.mxu0 %v2550_v62  ;;  %2210 = vmatprep.subr.mxu1 %v2467_v35 }
 0x1ed   :  { %843 = vmatpush1.msra.mxu0 %v2554_v0  ;;  %2211 = vmatpush3.msra.mxu1 %v2601_v16 }
 0x1ee   :  { %844 = vmatprep.subr.mxu0 %v2557_v2  ;;  %2212 = vmatprep.subr.mxu1 %v2467_v35 }
 0x1ef   :  { %845 = vmatpush1.msra.mxu0 %v2562_v6  ;;  %2213 = vmatpush3.msra.mxu1 %v2607_v17 }
 0x1f0   :  { %846 = vmatprep.subr.mxu0 %v2566_v7  ;;  %2214 = vmatprep.subr.mxu1 %v2467_v35 }
 0x1f1   :  { %847 = vmatpush1.msra.mxu0 %v2570_v9  ;;  %2215 = vmatpush3.msra.mxu1 %v2614_v18 }
 0x1f2   :  { %848 = vmatprep.subr.mxu0 %v2574_v10  ;;  %2216 = vmatprep.subr.mxu1 %v2467_v35 }
 0x1f3   :  { %849 = vmatpush1.msra.mxu0 %v2578_v12  ;;  %2217 = vmatpush3.msra.mxu1 %v2619_v19 }
 0x1f4   :  { %850 = vmatprep.subr.mxu0 %v2582_v13  ;;  %2218 = vmatprep.subr.mxu1 %v2467_v35 }
 0x1f5   :  { %851 = vmatpush1.msra.mxu0 %v2586_v14  ;;  %884 = vmatprep.mubr.f32.mxu0 %v2467_v35 }
 0x1f6   :  { %2219 = vmatpush3.msra.mxu1 %v2626_v20  ;;  %2220 = vmatprep.mubr.msk.f32.mxu1 %vm2468_vm2, %v2467_v35 }
 0x1f7   :  { %1002 = vmatprep.subr.mxu0 %v2520_v36  ;;  %2223 = vmatprep.subr.mxu1 %v2467_v35 }
 0x2a6   :  { %v720_v25 = vpop.f32.mrf.mxu0  ;;  %v791_v33 = vpop.f32.mrf.mxu1 }
 0x2a7   :  { %v795_v24 = vadd.f32 %v720_v25, %v2670_v38  ;;  %v809_v1 = vadd.f32 %v791_v33, %v2716_v40 }
 0x2a8   :  { %v2203_v29 = vpop.f32.mrf.mxu1  ;;  %v722_v43 = vpop.f32.mrf.mxu0 }
 0x2a9   :  { %v1971_v34 = vmul.f32 -1.442695, %v795_v24  ;;  %v802_v44 = vadd.f32 %v722_v43, %v2675_v42 }
 0x2ab   :  { %2361 = vpow2.f32 %v1971_v34  ;;  %v1972_v27 = vmul.f32 -1.442695, %v802_v44 }
 0x2ad   :  { %2363 = vpow2.f32 %v1972_v27 }
 0x2b8   :  { %v2362_v51 = vpop.eup %2361 }
 0x2b9   :  { %v799_v32 = vadd.f32 1.0, %v2362_v51 }
 0x2ba   :  { %v2364_v57 = vpop.eup %2363 }
 0x2bb   :  { %2365 = vrcp.f32 %v799_v32  ;;  %v806_v37 = vadd.f32 1.0, %v2364_v57 }
 0x2bd   :  { %2367 = vrcp.f32 %v806_v37 }
 0x2c8   :  { %v2366_v5 = vpop.eup %2365 }
 0x2c9   :  { %v810_v11 = vmul.f32 %v2366_v5, %v809_v1 }
 0x2ca   :  { %v2368_v31 = vpop.eup %2367 }
 0x2cb   :  { %v811_v38 = vadd.f32 %v810_v11, %v2668_v30  ;;  %v813_v25 = vsub.f32 1.0, %v2368_v31  ;;  %v815_v42 = vmul.f32 %v2368_v31, %v2720_v26 }
 0x2cd   :  { %2369 = vtanh.f32 %v811_v38 }
 0x2da   :  { %v2370_v24 = vpop.eup %2369 }
 0x2db   :  { %v814_v29 = vmul.f32 %v2370_v24, %v813_v25 }
 0x2dd   :  { %v2766_v34 = vadd.f32 %v815_v42, %v814_v29 }
 0x2df   :  { %1973 = vmatmul.mubr.msk.f32.vlgmr.msra.gmra.mxu0 %vm217_vm1, %v2766_v34  ;;  %2221 = vmatmul.mubr.msk.f32.vlgmr.msra.gmra.mxu1 %vm217_vm1, %v2766_v34 }
 0x2e0   :  { %1003 = vmatpush1.msra.mxu0 %v2524_v46  ;;  %2224 = vmatpush3.msra.mxu1 %v2526_v47 }
 0x2e1   :  { %1004 = vmatprep.subr.mxu0 %v2530_v50  ;;  %2225 = vmatprep.subr.mxu1 %v2467_v35 }
 0x2e2   :  { %1005 = vmatpush1.msra.mxu0 %v2534_v52  ;;  %2226 = vmatpush3.msra.mxu1 %v2546_v60 }
 0x2e3   :  { %1006 = vmatprep.subr.mxu0 %v2537_v54  ;;  %2227 = vmatprep.subr.mxu1 %v2467_v35 }
 0x2e4   :  { %1007 = vmatpush1.msra.mxu0 %v2544_v59  ;;  %2228 = vmatpush3.msra.mxu1 %v2596_v15 }
 0x2e5   :  { %1008 = vmatprep.subr.mxu0 %v2550_v62  ;;  %2229 = vmatprep.subr.mxu1 %v2467_v35 }
 0x2e6   :  { %1009 = vmatpush1.msra.mxu0 %v2554_v0  ;;  %2230 = vmatpush3.msra.mxu1 %v2601_v16 }
 0x2e7   :  { %1010 = vmatprep.subr.mxu0 %v2557_v2  ;;  %2231 = vmatprep.subr.mxu1 %v2467_v35 }
 0x2e8   :  { %1011 = vmatpush1.msra.mxu0 %v2562_v6  ;;  %2232 = vmatpush3.msra.mxu1 %v2607_v17 }
 0x2e9   :  { %1012 = vmatprep.subr.mxu0 %v2566_v7  ;;  %2233 = vmatprep.subr.mxu1 %v2467_v35 }
 0x2ea   :  { %1013 = vmatpush1.msra.mxu0 %v2570_v9  ;;  %2234 = vmatpush3.msra.mxu1 %v2614_v18 }
 0x2eb   :  { %1014 = vmatprep.subr.mxu0 %v2574_v10  ;;  %2235 = vmatprep.subr.mxu1 %v2467_v35 }
 0x2ec   :  { %1015 = vmatpush1.msra.mxu0 %v2578_v12  ;;  %2236 = vmatpush3.msra.mxu1 %v2619_v19 }
 0x2ed   :  { %1016 = vmatprep.subr.mxu0 %v2582_v13  ;;  %2237 = vmatprep.subr.mxu1 %v2467_v35 }
 0x2ee   :  { %1017 = vmatpush1.msra.mxu0 %v2586_v14  ;;  %1050 = vmatprep.mubr.f32.mxu0 %v2467_v35 }
 0x2ef   :  { %2238 = vmatpush3.msra.mxu1 %v2626_v20  ;;  %2239 = vmatprep.mubr.msk.f32.mxu1 %vm2468_vm2, %v2467_v35 }
 0x2f0   :  { %1168 = vmatprep.subr.mxu0 %v2520_v36  ;;  %2242 = vmatprep.subr.mxu1 %v2467_v35 }
 0x39f   :  { %v886_v30 = vpop.f32.mrf.mxu0  ;;  %v957_v33 = vpop.f32.mrf.mxu1 }
 0x3a0   :  { %v961_v43 = vadd.f32 %v886_v30, %v2680_v48  ;;  %v975_v38 = vadd.f32 %v957_v33, %v2716_v40 }
 0x3a1   :  { %v2222_v44 = vpop.f32.mrf.mxu1  ;;  %v888_v51 = vpop.f32.mrf.mxu0 }
 0x3a2   :  { %v1975_v27 = vmul.f32 -1.442695, %v961_v43  ;;  %v968_v32 = vadd.f32 %v888_v51, %v2685_v55 }
 0x3a4   :  { %2371 = vpow2.f32 %v1975_v27  ;;  %v1976_v57 = vmul.f32 -1.442695, %v968_v32 }
 0x3a6   :  { %2373 = vpow2.f32 %v1976_v57 }
 0x3b1   :  { %v2372_v37 = vpop.eup %2371 }
 0x3b2   :  { %v965_v1 = vadd.f32 1.0, %v2372_v37 }
 0x3b3   :  { %v2374_v5 = vpop.eup %2373 }
 0x3b4   :  { %2375 = vrcp.f32 %v965_v1  ;;  %v972_v11 = vadd.f32 1.0, %v2374_v5 }
 0x3b6   :  { %2377 = vrcp.f32 %v972_v11 }
 0x3c1   :  { %v2376_v31 = vpop.eup %2375 }
 0x3c2   :  { %v976_v25 = vmul.f32 %v2376_v31, %v975_v38 }
 0x3c3   :  { %v2378_v24 = vpop.eup %2377 }
 0x3c4   :  { %v977_v48 = vadd.f32 %v976_v25, %v2678_v45  ;;  %v979_v29 = vsub.f32 1.0, %v2378_v24  ;;  %v981_v55 = vmul.f32 %v2378_v24, %v2766_v34 }
 0x3c6   :  { %2379 = vtanh.f32 %v977_v48 }
 0x3d3   :  { %v2380_v42 = vpop.eup %2379 }
 0x3d4   :  { %v980_v30 = vmul.f32 %v2380_v42, %v979_v29 }
 0x3d6   :  { %v2812_v43 = vadd.f32 %v981_v55, %v980_v30 }
 0x3d8   :  { %1977 = vmatmul.mubr.msk.f32.vlgmr.msra.gmra.mxu0 %vm217_vm1, %v2812_v43  ;;  %2240 = vmatmul.mubr.msk.f32.vlgmr.msra.gmra.mxu1 %vm217_vm1, %v2812_v43 }
 0x3d9   :  { %1169 = vmatpush1.msra.mxu0 %v2524_v46  ;;  %2243 = vmatpush3.msra.mxu1 %v2526_v47 }
 0x3da   :  { %1170 = vmatprep.subr.mxu0 %v2530_v50  ;;  %2244 = vmatprep.subr.mxu1 %v2467_v35 }
 0x3db   :  { %1171 = vmatpush1.msra.mxu0 %v2534_v52  ;;  %2245 = vmatpush3.msra.mxu1 %v2546_v60 }
 0x3dc   :  { %1172 = vmatprep.subr.mxu0 %v2537_v54  ;;  %2246 = vmatprep.subr.mxu1 %v2467_v35 }
 0x3dd   :  { %1173 = vmatpush1.msra.mxu0 %v2544_v59  ;;  %2247 = vmatpush3.msra.mxu1 %v2596_v15 }
 0x3de   :  { %1174 = vmatprep.subr.mxu0 %v2550_v62  ;;  %2248 = vmatprep.subr.mxu1 %v2467_v35 }
 0x3df   :  { %1175 = vmatpush1.msra.mxu0 %v2554_v0  ;;  %2249 = vmatpush3.msra.mxu1 %v2601_v16 }
 0x3e0   :  { %1176 = vmatprep.subr.mxu0 %v2557_v2  ;;  %2250 = vmatprep.subr.mxu1 %v2467_v35 }
 0x3e1   :  { %1177 = vmatpush1.msra.mxu0 %v2562_v6  ;;  %2251 = vmatpush3.msra.mxu1 %v2607_v17 }
 0x3e2   :  { %1178 = vmatprep.subr.mxu0 %v2566_v7  ;;  %2252 = vmatprep.subr.mxu1 %v2467_v35 }
 0x3e3   :  { %1179 = vmatpush1.msra.mxu0 %v2570_v9  ;;  %2253 = vmatpush3.msra.mxu1 %v2614_v18 }
 0x3e4   :  { %1180 = vmatprep.subr.mxu0 %v2574_v10  ;;  %2254 = vmatprep.subr.mxu1 %v2467_v35 }
 0x3e5   :  { %1181 = vmatpush1.msra.mxu0 %v2578_v12  ;;  %2255 = vmatpush3.msra.mxu1 %v2619_v19 }
 0x3e6   :  { %1182 = vmatprep.subr.mxu0 %v2582_v13  ;;  %2256 = vmatprep.subr.mxu1 %v2467_v35 }
 0x3e7   :  { %1183 = vmatpush1.msra.mxu0 %v2586_v14  ;;  %1216 = vmatprep.mubr.f32.mxu0 %v2467_v35 }
 0x3e8   :  { %2257 = vmatpush3.msra.mxu1 %v2626_v20  ;;  %2258 = vmatprep.mubr.msk.f32.mxu1 %vm2468_vm2, %v2467_v35 }
 0x3e9   :  { %1334 = vmatprep.subr.mxu0 %v2520_v36  ;;  %2261 = vmatprep.subr.mxu1 %v2467_v35 }
 0x498   :  { %v1052_v45 = vpop.f32.mrf.mxu0  ;;  %v1123_v33 = vpop.f32.mrf.mxu1 }
 0x499   :  { %v1127_v44 = vadd.f32 %v1052_v45, %v2690_v61  ;;  %v1141_v31 = vadd.f32 %v1123_v33, %v2716_v40 }
 0x49a   :  { %v2241_v27 = vpop.f32.mrf.mxu1  ;;  %v1054_v32 = vpop.f32.mrf.mxu0 }
 0x49b   :  { %v1979_v51 = vmul.f32 -1.442695, %v1127_v44  ;;  %v1134_v57 = vadd.f32 %v1054_v32, %v2695_v4 }
 0x49d   :  { %2381 = vpow2.f32 %v1979_v51  ;;  %v1980_v37 = vmul.f32 -1.442695, %v1134_v57 }
 0x49f   :  { %2383 = vpow2.f32 %v1980_v37 }
 0x4aa   :  { %v2382_v1 = vpop.eup %2381 }
 0x4ab   :  { %v1131_v5 = vadd.f32 1.0, %v2382_v1 }
 0x4ac   :  { %v2384_v11 = vpop.eup %2383 }
 0x4ad   :  { %2385 = vrcp.f32 %v1131_v5  ;;  %v1138_v38 = vadd.f32 1.0, %v2384_v11 }
 0x4af   :  { %2387 = vrcp.f32 %v1138_v38 }
 0x4ba   :  { %v2386_v25 = vpop.eup %2385 }
 0x4bb   :  { %v1142_v48 = vmul.f32 %v2386_v25, %v1141_v31 }
 0x4bc   :  { %v2388_v24 = vpop.eup %2387 }
 0x4bd   :  { %v1143_v61 = vadd.f32 %v1142_v48, %v2673_v41  ;;  %v1145_v29 = vsub.f32 1.0, %v2388_v24  ;;  %v1147_v4 = vmul.f32 %v2388_v24, %v2812_v43 }
 0x4bf   :  { %2389 = vtanh.f32 %v1143_v61 }
 0x4cc   :  { %v2390_v42 = vpop.eup %2389 }
 0x4cd   :  { %v1146_v30 = vmul.f32 %v2390_v42, %v1145_v29 }
 0x4cf   :  { %v2858_v55 = vadd.f32 %v1147_v4, %v1146_v30 }
 0x4d1   :  { %1981 = vmatmul.mubr.msk.f32.vlgmr.msra.gmra.mxu0 %vm217_vm1, %v2858_v55  ;;  %2259 = vmatmul.mubr.msk.f32.vlgmr.msra.gmra.mxu1 %vm217_vm1, %v2858_v55 }
 0x4d2   :  { %1335 = vmatpush1.msra.mxu0 %v2524_v46  ;;  %2262 = vmatpush3.msra.mxu1 %v2526_v47 }
 0x4d3   :  { %1336 = vmatprep.subr.mxu0 %v2530_v50  ;;  %2263 = vmatprep.subr.mxu1 %v2467_v35 }
 0x4d4   :  { %1337 = vmatpush1.msra.mxu0 %v2534_v52  ;;  %2264 = vmatpush3.msra.mxu1 %v2546_v60 }
 0x4d5   :  { %1338 = vmatprep.subr.mxu0 %v2537_v54  ;;  %2265 = vmatprep.subr.mxu1 %v2467_v35 }
 0x4d6   :  { %1339 = vmatpush1.msra.mxu0 %v2544_v59  ;;  %2266 = vmatpush3.msra.mxu1 %v2596_v15 }
 0x4d7   :  { %1340 = vmatprep.subr.mxu0 %v2550_v62  ;;  %2267 = vmatprep.subr.mxu1 %v2467_v35 }
 0x4d8   :  { %1341 = vmatpush1.msra.mxu0 %v2554_v0  ;;  %2268 = vmatpush3.msra.mxu1 %v2601_v16 }
 0x4d9   :  { %1342 = vmatprep.subr.mxu0 %v2557_v2  ;;  %2269 = vmatprep.subr.mxu1 %v2467_v35 }
 0x4da   :  { %1343 = vmatpush1.msra.mxu0 %v2562_v6  ;;  %2270 = vmatpush3.msra.mxu1 %v2607_v17 }
 0x4db   :  { %1344 = vmatprep.subr.mxu0 %v2566_v7  ;;  %2271 = vmatprep.subr.mxu1 %v2467_v35 }
 0x4dc   :  { %1345 = vmatpush1.msra.mxu0 %v2570_v9  ;;  %2272 = vmatpush3.msra.mxu1 %v2614_v18 }
 0x4dd   :  { %1346 = vmatprep.subr.mxu0 %v2574_v10  ;;  %2273 = vmatprep.subr.mxu1 %v2467_v35 }
 0x4de   :  { %1347 = vmatpush1.msra.mxu0 %v2578_v12  ;;  %2274 = vmatpush3.msra.mxu1 %v2619_v19 }
 0x4df   :  { %1348 = vmatprep.subr.mxu0 %v2582_v13  ;;  %2275 = vmatprep.subr.mxu1 %v2467_v35 }
 0x4e0   :  { %1349 = vmatpush1.msra.mxu0 %v2586_v14  ;;  %1382 = vmatprep.mubr.f32.mxu0 %v2467_v35 }
 0x4e1   :  { %2276 = vmatpush3.msra.mxu1 %v2626_v20  ;;  %2277 = vmatprep.mubr.msk.f32.mxu1 %vm2468_vm2, %v2467_v35 }
 0x4e2   :  { %1500 = vmatprep.subr.mxu0 %v2520_v36  ;;  %2280 = vmatprep.subr.mxu1 %v2467_v35 }
 0x591   :  { %v1218_v41 = vpop.f32.mrf.mxu0  ;;  %v1289_v45 = vpop.f32.mrf.mxu1 }
 0x592   :  { %v1293_v33 = vadd.f32 %v1218_v41, %v2700_v22  ;;  %v1307_v36 = vadd.f32 %v1289_v45, %v2716_v40 }
 0x593   :  { %v2260_v44 = vpop.f32.mrf.mxu1  ;;  %v1220_v51 = vpop.f32.mrf.mxu0 }
 0x594   :  { %v1983_v27 = vmul.f32 -1.442695, %v1293_v33  ;;  %v1300_v32 = vadd.f32 %v1220_v51, %v2702_v28 }
 0x596   :  { %2391 = vpow2.f32 %v1983_v27  ;;  %v1984_v57 = vmul.f32 -1.442695, %v1300_v32 }
 0x598   :  { %2393 = vpow2.f32 %v1984_v57  ;;  %v2432_v57 = vld [vmem:[#allocation2 + $0x1b0] sm:$0xff] }
 0x5a3   :  { %v2392_v37 = vpop.eup %2391 }
 0x5a4   :  { %v1297_v1 = vadd.f32 1.0, %v2392_v37  ;;  %v2433_v37 = vld [vmem:[#allocation2 + $0x1c0] sm:$0xff] }
 0x5a5   :  { %v2394_v5 = vpop.eup %2393 }
 0x5a6   :  { %2395 = vrcp.f32 %v1297_v1  ;;  %v1304_v11 = vadd.f32 1.0, %v2394_v5  ;;  %v2435_v1 = vld [vmem:[#allocation2 + $0x198] sm:$0xff]  ;;  %v2436_v5 = vld [vmem:[#allocation2 + $0x1a8] sm:$0xff] }
 0x5a8   :  { %2397 = vrcp.f32 %v1304_v11  ;;  %v2437_v11 = vld [vmem:[#allocation2 + $0x188] sm:$0xff] }
 0x5b3   :  { %v2396_v38 = vpop.eup %2395 }
 0x5b4   :  { %v1308_v31 = vmul.f32 %v2396_v38, %v1307_v36  ;;  %v2438_v36 = vld [vmem:[#allocation2 + $0x180] sm:$0xff]  ;;  %v2439_v38 = vld [vmem:[#allocation2 + $0x170] sm:$0xff] }
 0x5b5   :  { %v2398_v25 = vpop.eup %2397 }
 0x5b6   :  { %v1309_v22 = vadd.f32 %v1308_v31, %v2688_v58  ;;  %v1311_v48 = vsub.f32 1.0, %v2398_v25  ;;  %v1313_v28 = vmul.f32 %v2398_v25, %v2858_v55  ;;  %v2440_v31 = vld [vmem:[#allocation2 + $0x168] sm:$0xff] }
 0x5b8   :  { %2399 = vtanh.f32 %v1309_v22  ;;  %v2441_v22 = vld [vmem:[#allocation2 + $0x158] sm:$0xff] }
 0x5c5   :  { %v2400_v61 = vpop.eup %2399 }
 0x5c6   :  { %v1312_v24 = vmul.f32 %v2400_v61, %v1311_v48 }
 0x5c8   :  { %v2904_v29 = vadd.f32 %v1313_v28, %v1312_v24 }
 0x5ca   :  { %1985 = vmatmul.mubr.msk.f32.vlgmr.msra.gmra.mxu0 %vm217_vm1, %v2904_v29  ;;  %2278 = vmatmul.mubr.msk.f32.vlgmr.msra.gmra.mxu1 %vm217_vm1, %v2904_v29 }
 0x5cb   :  { %1501 = vmatpush1.msra.mxu0 %v2524_v46  ;;  %2281 = vmatpush3.msra.mxu1 %v2526_v47  ;;  %v2431_v46 = vld [vmem:[#allocation2 + $0x1b8] sm:$0xff] }
 0x5cc   :  { %1502 = vmatprep.subr.mxu0 %v2530_v50  ;;  %2282 = vmatprep.subr.mxu1 %v2467_v35 }
 0x5cd   :  { %1503 = vmatpush1.msra.mxu0 %v2534_v52  ;;  %2283 = vmatpush3.msra.mxu1 %v2546_v60 }
 0x5ce   :  { %1504 = vmatprep.subr.mxu0 %v2537_v54  ;;  %2284 = vmatprep.subr.mxu1 %v2467_v35 }
 0x5cf   :  { %1505 = vmatpush1.msra.mxu0 %v2544_v59  ;;  %2285 = vmatpush3.msra.mxu1 %v2596_v15 }
 0x5d0   :  { %1506 = vmatprep.subr.mxu0 %v2550_v62  ;;  %2286 = vmatprep.subr.mxu1 %v2467_v35 }
 0x5d1   :  { %1507 = vmatpush1.msra.mxu0 %v2554_v0  ;;  %2287 = vmatpush3.msra.mxu1 %v2601_v16 }
 0x5d2   :  { %1508 = vmatprep.subr.mxu0 %v2557_v2  ;;  %2288 = vmatprep.subr.mxu1 %v2467_v35 }
 0x5d3   :  { %1509 = vmatpush1.msra.mxu0 %v2562_v6  ;;  %2289 = vmatpush3.msra.mxu1 %v2607_v17 }
 0x5d4   :  { %1510 = vmatprep.subr.mxu0 %v2566_v7  ;;  %2290 = vmatprep.subr.mxu1 %v2467_v35 }
 0x5d5   :  { %1511 = vmatpush1.msra.mxu0 %v2570_v9  ;;  %2291 = vmatpush3.msra.mxu1 %v2614_v18 }
 0x5d6   :  { %1512 = vmatprep.subr.mxu0 %v2574_v10  ;;  %2292 = vmatprep.subr.mxu1 %v2467_v35 }
 0x5d7   :  { %1513 = vmatpush1.msra.mxu0 %v2578_v12  ;;  %2293 = vmatpush3.msra.mxu1 %v2619_v19 }
 0x5d8   :  { %1514 = vmatprep.subr.mxu0 %v2582_v13  ;;  %2294 = vmatprep.subr.mxu1 %v2467_v35 }
 0x5d9   :  { %1515 = vmatpush1.msra.mxu0 %v2586_v14  ;;  %1548 = vmatprep.mubr.f32.mxu0 %v2467_v35 }
 0x5da   :  { %2295 = vmatpush3.msra.mxu1 %v2626_v20  ;;  %2296 = vmatprep.mubr.msk.f32.mxu1 %vm2468_vm2, %v2467_v35 }
 0x5db   :  { %1666 = vmatprep.subr.mxu0 %v2431_v46  ;;  %2299 = vmatprep.subr.mxu1 %v2467_v35 }
 0x68a   :  { %v1384_v47 = vpop.f32.mrf.mxu0  ;;  %v1455_v50 = vpop.f32.mrf.mxu1 }
 0x68b   :  { %v1459_v52 = vadd.f32 %v1384_v47, %v2704_v39  ;;  %v1473_v4 = vadd.f32 %v1455_v50, %v2716_v40  ;;  %v1819_v50 = vld [vmem:[#allocation2 + $0x258] sm:$0xff] }
 0x68c   :  { %v2279_v54 = vpop.f32.mrf.mxu1  ;;  %v1386_v60 = vpop.f32.mrf.mxu0 }
 0x68d   :  { %v1987_v59 = vmul.f32 -1.442695, %v1459_v52  ;;  %v1466_v62 = vadd.f32 %v1386_v60, %v2706_v49  ;;  %v1817_v52 = vld [vmem:[#allocation2 + $0x228] sm:$0xff]  ;;  %v1816_v54 = vld [vmem:[#allocation2 + $0x210] sm:$0xff]  ;;  %v1814_v60 = vld [vmem:[#allocation2 + $0x1e0] sm:$0xff] }
 0x68f   :  { %2401 = vpow2.f32 %v1987_v59  ;;  %v1988_v0 = vmul.f32 -1.442695, %v1466_v62  ;;  %v1815_v59 = vld [vmem:[#allocation2 + $0x1f8] sm:$0xff]  ;;  %v1813_v62 = vld [vmem:[#allocation2 + $0x1c8] sm:$0xff] }
 0x691   :  { %2403 = vpow2.f32 %v1988_v0 }
 0x69c   :  { %v2402_v2 = vpop.eup %2401 }
 0x69d   :  { %v1463_v58 = vadd.f32 1.0, %v2402_v2 }
 0x69e   :  { %v2404_v42 = vpop.eup %2403 }
 0x69f   :  { %2405 = vrcp.f32 %v1463_v58  ;;  %v1470_v30 = vadd.f32 1.0, %v2404_v42 }
 0x6a1   :  { %2407 = vrcp.f32 %v1470_v30  ;;  %v1821_v30 = vld [vmem:[#allocation2 + $0x28b] ss:$0 sm:$0xff] }
 0x6ac   :  { %v2406_v41 = vpop.eup %2405 }
 0x6ad   :  { %v1474_v45 = vmul.f32 %v2406_v41, %v1473_v4 }
 0x6ae   :  { %v2408_v33 = vpop.eup %2407 }
 0x6af   :  { %v1475_v39 = vadd.f32 %v1474_v45, %v2683_v53  ;;  %v1477_v44 = vsub.f32 1.0, %v2408_v33  ;;  %v1479_v49 = vmul.f32 %v2408_v33, %v2904_v29  ;;  %v2434_v53 = vld [vmem:[#allocation2 + $0x1a0] sm:$0xff] }
 0x6b1   :  { %2409 = vtanh.f32 %v1475_v39 }
 0x6be   :  { %v2410_v27 = vpop.eup %2409 }
 0x6bf   :  { %v1478_v51 = vmul.f32 %v2410_v27, %v1477_v44 }
 0x6c1   :  { %v2949_v32 = vadd.f32 %v1479_v49, %v1478_v51 }
 0x6c3   :  { %1989 = vmatmul.mubr.msk.f32.vlgmr.msra.gmra.mxu0 %vm217_vm1, %v2949_v32  ;;  %2297 = vmatmul.mubr.msk.f32.vlgmr.msra.gmra.mxu1 %vm217_vm1, %v2949_v32 }
 0x6c4   :  { %1667 = vmatpush1.msra.mxu0 %v2432_v57  ;;  %2300 = vmatpush3.msra.mxu1 %v2433_v37 }
 0x6c5   :  { %1668 = vmatprep.subr.mxu0 %v2434_v53  ;;  %2301 = vmatprep.subr.mxu1 %v2467_v35 }
 0x6c6   :  { %1669 = vmatpush1.msra.mxu0 %v2435_v1  ;;  %2302 = vmatpush3.msra.mxu1 %v2436_v5 }
 0x6c7   :  { %1670 = vmatprep.subr.mxu0 %v2437_v11  ;;  %2303 = vmatprep.subr.mxu1 %v2467_v35 }
 0x6c8   :  { %1671 = vmatpush1.msra.mxu0 %v2438_v36  ;;  %2304 = vmatpush3.msra.mxu1 %v2596_v15 }
 0x6c9   :  { %1672 = vmatprep.subr.mxu0 %v2439_v38  ;;  %2305 = vmatprep.subr.mxu1 %v2467_v35 }
 0x6ca   :  { %1673 = vmatpush1.msra.mxu0 %v2440_v31  ;;  %2306 = vmatpush3.msra.mxu1 %v2601_v16 }
 0x6cb   :  { %1674 = vmatprep.subr.mxu0 %v2441_v22  ;;  %2307 = vmatprep.subr.mxu1 %v2467_v35 }
 0x6cc   :  { %1675 = vmatpush1.msra.mxu0 %v2562_v6  ;;  %2308 = vmatpush3.msra.mxu1 %v2607_v17  ;;  %v1820_v6 = vld [vmem:[#allocation2 + $0x270] sm:$0xff] }
 0x6cd   :  { %1676 = vmatprep.subr.mxu0 %v2566_v7  ;;  %2309 = vmatprep.subr.mxu1 %v2467_v35 }
 0x6ce   :  { %1677 = vmatpush1.msra.mxu0 %v2570_v9  ;;  %2310 = vmatpush3.msra.mxu1 %v2614_v18 }
 0x6cf   :  { %1678 = vmatprep.subr.mxu0 %v2574_v10  ;;  %2311 = vmatprep.subr.mxu1 %v2467_v35 }
 0x6d0   :  { %1679 = vmatpush1.msra.mxu0 %v2578_v12  ;;  %2312 = vmatpush3.msra.mxu1 %v2619_v19 }
 0x6d1   :  { %1680 = vmatprep.subr.mxu0 %v2582_v13  ;;  %2313 = vmatprep.subr.mxu1 %v2467_v35 }
 0x6d2   :  { %1681 = vmatpush1.msra.mxu0 %v2586_v14  ;;  %1714 = vmatprep.mubr.f32.mxu0 %v2467_v35 }
 0x6d3   :  { %2314 = vmatpush3.msra.mxu1 %v2626_v20  ;;  %2315 = vmatprep.mubr.msk.f32.mxu1 %vm2468_vm2, %v2467_v35 }
 0x6d4   :  { %2318 = vmatprep.subr.mxu0 %v1820_v6 }
 0x783   :  { %v1550_v7 = vpop.f32.mrf.mxu0  ;;  %v1621_v9 = vpop.f32.mrf.mxu1 }
 0x784   :  { %v1625_v10 = vadd.f32 %v1550_v7, %v2708_v56  ;;  %v1639_v35 = vadd.f32 %v1621_v9, %v2716_v40 }
 0x785   :  { %v2298_v12 = vpop.f32.mrf.mxu1  ;;  %v1552_v13 = vpop.f32.mrf.mxu0 }
 0x786   :  { %v1991_v15 = vmul.f32 -1.442695, %v1625_v10  ;;  %v1632_v16 = vadd.f32 %v1552_v13, %v2710_v63 }
 0x788   :  { %2411 = vpow2.f32 %v1991_v15  ;;  %v1992_v14 = vmul.f32 -1.442695, %v1632_v16 }
 0x78a   :  { %2413 = vpow2.f32 %v1992_v14 }
 0x795   :  { %v2412_v17 = vpop.eup %2411 }
 0x796   :  { %v1629_v18 = vadd.f32 1.0, %v2412_v17 }
 0x797   :  { %v2414_v19 = vpop.eup %2413 }
 0x798   :  { %2415 = vrcp.f32 %v1629_v18  ;;  %v1636_v20 = vadd.f32 1.0, %v2414_v19 }
 0x79a   :  { %2417 = vrcp.f32 %v1636_v20 }
 0x7a5   :  { %v2416_v25 = vpop.eup %2415 }
 0x7a6   :  { %v1640_v48 = vmul.f32 %v2416_v25, %v1639_v35 }
 0x7a7   :  { %v2418_v61 = vpop.eup %2417 }
 0x7a8   :  { %v1641_v56 = vadd.f32 %v1640_v48, %v2698_v21  ;;  %v1643_v24 = vsub.f32 1.0, %v2418_v61  ;;  %v1645_v63 = vmul.f32 %v2418_v61, %v2949_v32  ;;  %v1818_v21 = vld [vmem:[#allocation2 + $0x240] sm:$0xff] }
 0x7aa   :  { %2419 = vtanh.f32 %v1641_v56 }
 0x7b7   :  { %v2420_v28 = vpop.eup %2419 }
 0x7b8   :  { %v1644_v46 = vmul.f32 %v2420_v28, %v1643_v24 }
 0x7ba   :  { %v2983_v47 = vadd.f32 %v1645_v63, %v1644_v46 }
 0x7bc   :  { %1993 = vmatmul.mubr.msk.f32.vlgmr.msra.gmra.mxu0 %vm217_vm1, %v2983_v47  ;;  %2316 = vmatmul.mubr.msk.f32.vlgmr.msra.gmra.mxu1 %vm217_vm1, %v2983_v47 }
 0x7bd   :  { %2319 = vmatpush3.msra.mxu0 %v1820_v6  ;;  %2334 = vmatprep.mubr.msk.f32.mxu0 %vm217_vm1, %v2720_v26 }
 0x7be   :  { %2320 = vmatprep.subr.mxu0 %v1819_v50 }
 0x7bf   :  { %2321 = vmatpush3.msra.mxu0 %v1819_v50 }
 0x7c0   :  { %2322 = vmatprep.subr.mxu0 %v1818_v21 }
 0x7c1   :  { %2323 = vmatpush3.msra.mxu0 %v1818_v21 }
 0x7c2   :  { %2324 = vmatprep.subr.mxu0 %v1817_v52 }
 0x7c3   :  { %2325 = vmatpush3.msra.mxu0 %v1817_v52 }
 0x7c4   :  { %2326 = vmatprep.subr.mxu0 %v1816_v54 }
 0x7c5   :  { %2327 = vmatpush3.msra.mxu0 %v1816_v54 }
 0x7c6   :  { %2328 = vmatprep.subr.mxu0 %v1815_v59 }
 0x7c7   :  { %2329 = vmatpush3.msra.mxu0 %v1815_v59 }
 0x7c8   :  { %2330 = vmatprep.subr.mxu0 %v1814_v60 }
 0x7c9   :  { %2331 = vmatpush3.msra.mxu0 %v1814_v60 }
 0x7ca   :  { %2332 = vmatprep.subr.mxu0 %v1813_v62 }
 0x7cb   :  { %2333 = vmatpush3.msra.mxu0 %v1813_v62 }
 0x7cc   :  { %2335 = vmatmul.mubr.msk.f32.vlgmr.msra.gmra.mxu0 %vm217_vm1, %v2766_v34 }
 0x7cd   :  { %2337 = vmatprep.mubr.msk.f32.mxu0 %vm217_vm1, %v2812_v43 }
 0x7d0   :  { %2338 = vmatmul.mubr.msk.f32.gmra.mxu0 %vm217_vm1, %v2858_v55 }
 0x7d1   :  { %2340 = vmatprep.mubr.msk.f32.mxu0 %vm217_vm1, %v2904_v29 }
 0x7d4   :  { %2341 = vmatmul.mubr.msk.f32.gmra.mxu0 %vm217_vm1, %v2949_v32 }
 0x7d5   :  { %2343 = vmatprep.mubr.msk.f32.mxu0 %vm217_vm1, %v2983_v47 }
 0x87c   :  { %v1716_v26 = vpop.f32.mrf.mxu0  ;;  %v1787_v0 = vpop.f32.mrf.mxu1 }
 0x87d   :  { %v1791_v2 = vadd.f32 %v1716_v26, %v2712_v8  ;;  %v1805_v1 = vadd.f32 %v1787_v0, %v2716_v40 }
 0x87e   :  { %v2317_v34 = vpop.f32.mrf.mxu1  ;;  %v1718_v42 = vpop.f32.mrf.mxu0 }
 0x87f   :  { %v1995_v58 = vmul.f32 -1.442695, %v1791_v2  ;;  %v1798_v43 = vadd.f32 %v1718_v42, %v2714_v23 }
 0x881   :  { %2421 = vpow2.f32 %v1995_v58  ;;  %v1996_v55 = vmul.f32 -1.442695, %v1798_v43 }
 0x883   :  { %2423 = vpow2.f32 %v1996_v55 }
 0x88c   :  { %v2336_v29 = vpop.f32.mrf.mxu0 }
 0x88d   :  { %v1897_v4 = vadd.f32 %v2336_v29, %v1821_v30 }
 0x88e   :  { %v2422_v41 = vpop.eup %2421  ;;  %v1891_v45 = vpop.f32.mrf.mxu0 }
 0x88f   :  { %v1795_v39 = vadd.f32 1.0, %v2422_v41  ;;  %1931 = vst [vmem:[%s3035_s2 + $0x8] sm:$0xff] %v1897_v4  ;;  %v1892_v33 = vadd.f32 %v1891_v45, %v1821_v30 }
 0x890   :  { %v2339_v8 = vpop.f32.mrf.mxu0  ;;  %v2424_v37 = vpop.eup %2423 }
 0x891   :  { %2425 = vrcp.f32 %v1795_v39  ;;  %1930 = vst [vmem:[%s3035_s2] sm:$0xff] %v1892_v33  ;;  %v1907_v23 = vadd.f32 %v2339_v8, %v1821_v30  ;;  %v1802_v53 = vadd.f32 1.0, %v2424_v37 }
 0x892   :  { %v1901_v44 = vpop.f32.mrf.mxu0 }
 0x893   :  { %1933 = vst [vmem:[%s3035_s2 + $0x18] sm:$0xff] %v1907_v23  ;;  %v1902_v27 = vadd.f32 %v1901_v44, %v1821_v30  ;;  %2427 = vrcp.f32 %v1802_v53 }
 0x894   :  { %v2342_v51 = vpop.f32.mrf.mxu0 }
 0x895   :  { %1932 = vst [vmem:[%s3035_s2 + $0x10] sm:$0xff] %v1902_v27  ;;  %v1917_v49 = vadd.f32 %v2342_v51, %v1821_v30 }
 0x896   :  { %v1911_v32 = vpop.f32.mrf.mxu0 }
 0x897   :  { %1935 = vst [vmem:[%s3035_s2 + $0x28] sm:$0xff] %v1917_v49  ;;  %v1912_v57 = vadd.f32 %v1911_v32, %v1821_v30 }
 0x899   :  { %1934 = vst [vmem:[%s3035_s2 + $0x20] sm:$0xff] %v1912_v57 }
 0x89e   :  { %v2426_v5 = vpop.eup %2425 }
 0x89f   :  { %v1806_v11 = vmul.f32 %v2426_v5, %v1805_v1 }
 0x8a0   :  { %v2428_v38 = vpop.eup %2427 }
 0x8a1   :  { %v1807_v36 = vadd.f32 %v1806_v11, %v2693_v3  ;;  %v1809_v31 = vsub.f32 1.0, %v2428_v38  ;;  %v1811_v7 = vmul.f32 %v2428_v38, %v2983_v47 }
 0x8a3   :  { %2429 = vtanh.f32 %v1807_v36 }
 0x8b0   :  { %v2430_v22 = vpop.eup %2429 }
 0x8b1   :  { %v1810_v6 = vmul.f32 %v2430_v22, %v1809_v31 }
 0x8b3   :  { %v1812_v9 = vadd.f32 %v1811_v7, %v1810_v6 }
 0x8b5   :  { %2344 = vmatmul.mubr.msk.f32.gmra.mxu0 %vm217_vm1, %v1812_v9 }
 0x975   :  { %v2345_v10 = vpop.f32.mrf.mxu0 }
 0x976   :  { %v1927_v12 = vadd.f32 %v2345_v10, %v1821_v30 }
 0x977   :  { %v1921_v15 = vpop.f32.mrf.mxu0 }
 0x978   :  { %1937 = vst [vmem:[%s3035_s2 + $0x38] sm:$0xff] %v1927_v12  ;;  %v1922_v40 = vadd.f32 %v1921_v15, %v1821_v30 }
 0x97a   :  { %1936 = vst [vmem:[%s3035_s2 + $0x30] sm:$0xff] %v1922_v40 }
 0x97b   :  { %1942 = vsyncpa [#allocation3], 1 }

</bundles_post_ra>
